<compile_context>
chip_gen: v6e
topology: v6e:2x2x1
jax: 0.10.0
libtpu: 0.0.40
codegen_flags: <defaults>
</compile_context>

<pallas_src>
import jax
import jax.numpy as jnp
from jax import lax
from jax.experimental import pallas as pl
from jax.experimental.pallas import tpu as pltpu


def _lstm_kernel(pre1_ref,    # (T, B, 4H)  x @ W_ih1 + b1, gate cols [i,f,o,g]
                 whh1_ref,    # (H, 4H)     layer-1 recurrent weights
                 wih2_ref,    # (H, 4H)     layer-2 input weights
                 whh2_ref,    # (H, 4H)     layer-2 recurrent weights
                 b2_ref,      # (1, 4H)     b_ih2 + b_hh2
                 h2out_ref):  # (T, B, H)   per-step layer-2 hidden states
    T, B, _ = pre1_ref.shape
    H = whh1_ref.shape[0]

    # Hoist the bias broadcast: JAX does not CSE broadcast_in_dim, so doing
    # this inside the unrolled body would re-materialize it T times.
    b2b = jnp.broadcast_to(b2_ref[...], (B, 4 * H))

    def gates_to_hc(gates, c):
        # gate layout: [i | f | o | g]  -> one sigmoid slab + one tanh
        ifo = jax.nn.sigmoid(gates[:, :3 * H])
        g_g = jnp.tanh(gates[:, 3 * H:])
        i_g = ifo[:, 0 * H:1 * H]
        f_g = ifo[:, 1 * H:2 * H]
        o_g = ifo[:, 2 * H:3 * H]
        c_new = f_g * c + i_g * g_g
        h_new = o_g * jnp.tanh(c_new)
        return h_new, c_new

    def body(t, carry):
        h1, c1, h2, c2 = carry
        # Off-critical-path partial for layer 2: depends only on step t-1's
        # h2, so it can overlap layer-1's recurrent matmul / gate EUP work.
        part2 = jnp.dot(h2, whh2_ref[...],
                        preferred_element_type=jnp.float32) + b2b
        # Layer 1: input projection precomputed in the wrapper; only the
        # recurrent matmul sits on the serial chain.
        g1 = pre1_ref[t] + jnp.dot(h1, whh1_ref[...],
                                   preferred_element_type=jnp.float32)
        h1n, c1n = gates_to_hc(g1, c1)
        # Layer 2: only the h1n-dependent half remains on the critical path
        # (no per-step lane concatenate any more).
        g2 = part2 + jnp.dot(h1n, wih2_ref[...],
                             preferred_element_type=jnp.float32)
        h2n, c2n = gates_to_hc(g2, c2)
        h2out_ref[t] = h2n
        return (h1n, c1n, h2n, c2n)

    zeros = jnp.zeros((B, H), jnp.float32)
    # unroll=True is fine at T=8; cap the unroll (2..4) if T grows to
    # realistic trajectory lengths to avoid vreg spills.
    lax.fori_loop(0, T, body, (zeros, zeros, zeros, zeros), unroll=True)


def _reorder_cols(w):
    """Reorder 4H gate columns from PyTorch (i,f,g,o) to kernel (i,f,o,g)."""
    i, f, g, o = jnp.split(w, 4, axis=-1)
    return jnp.concatenate([i, f, o, g], axis=-1)


def prepare_params(params):
    """One-time parameter prep, kept OUT of the jitted per-call forward."""
    return {
        "wih1": _reorder_cols(params["wih1"]),
        "whh1": _reorder_cols(params["whh1"]),
        "b1":   _reorder_cols(params["b1"]),
        "wih2": _reorder_cols(params["wih2"]),
        "whh2": _reorder_cols(params["whh2"]),
        "b2":   _reorder_cols(params["b2"]),
        "wfc":  params["wfc"],
        "bfc":  params["bfc"],
    }


@jax.jit
def trajectory_predictor(x, prepped):
    """x: (B, T, 2) float32 (batch_first, like PyTorch). Returns (B, T, 2)."""
    B, T, _ = x.shape
    H = prepped["whh1"].shape[0]

    # Layer-1 input projection for all timesteps: one big matmul, off the
    # serial critical path, laid out time-major for the kernel.
    pre1 = jnp.einsum("btf,fg->tbg", x, prepped["wih1"]) + prepped["b1"]

    full = lambda shape: pl.BlockSpec(shape, lambda i: (0,) * len(shape))

    h2_all = pl.pallas_call(
        _lstm_kernel,
        out_shape=jax.ShapeDtypeStruct((T, B, H), jnp.float32),
        grid_spec=pltpu.PrefetchScalarGridSpec(
            num_scalar_prefetch=0,
            grid=(1,),
            in_specs=[
                full((T, B, 4 * H)),   # pre1
                full((H, 4 * H)),      # whh1
                full((H, 4 * H)),      # wih2
                full((H, 4 * H)),      # whh2
                full((1, 4 * H)),      # b2
            ],
            out_specs=full((T, B, H)),
        ),
        compiler_params=pltpu.CompilerParams(
            dimension_semantics=("arbitrary",)),
    )(pre1, prepped["whh1"], prepped["wih2"], prepped["whh2"], prepped["b2"])

    # Final projection hoisted out of the recurrent kernel: one batched matmul.
    y = jnp.einsum("tbh,hk->btk", h2_all, prepped["wfc"]) + prepped["bfc"]
    return y  # (B, T, 2)


def init_params(key, hidden_size=64, input_size=2, out_size=2):
    """Deterministic init mirroring nn.LSTM / nn.Linear shapes.

    Weights are stored already transposed (in_features, out_features) with
    PyTorch gate order (i, f, g, o); the two LSTM bias vectors per layer are
    pre-summed.
    """
    H = hidden_size
    k = 1.0 / jnp.sqrt(jnp.float32(H))
    keys = jax.random.split(key, 10)
    u = lambda kk, shape: jax.random.uniform(kk, shape, jnp.float32, -k, k)
    return {
        "wih1": u(keys[0], (input_size, 4 * H)),
        "whh1": u(keys[1], (H, 4 * H)),
        "b1":   u(keys[2], (1, 4 * H)) + u(keys[3], (1, 4 * H)),
        "wih2": u(keys[4], (H, 4 * H)),
        "whh2": u(keys[5], (H, 4 * H)),
        "b2":   u(keys[6], (1, 4 * H)) + u(keys[7], (1, 4 * H)),
        "wfc":  u(keys[8], (H, out_size)),
        "bfc":  u(keys[9], (1, out_size)),
    }


def _reference(x, params):
    """Pure-JAX reference of the same forward pass (for correctness check)."""
    B, T, _ = x.shape
    H = params["whh1"].shape[0]

    def step(carry, x_t):
        h1, c1, h2, c2 = carry

        def cell(x_in, wih, whh, b, h, c):
            g = x_in @ wih + h @ whh + b
            i = jax.nn.sigmoid(g[:, 0 * H:1 * H])
            f = jax.nn.sigmoid(g[:, 1 * H:2 * H])
            gg = jnp.tanh(g[:, 2 * H:3 * H])
            o = jax.nn.sigmoid(g[:, 3 * H:4 * H])
            c_new = f * c + i * gg
            return o * jnp.tanh(c_new), c_new

        h1, c1 = cell(x_t, params["wih1"], params["whh1"], params["b1"], h1, c1)
        h2, c2 = cell(h1, params["wih2"], params["whh2"], params["b2"], h2, c2)
        y = h2 @ params["wfc"] + params["bfc"]
        return (h1, c1, h2, c2), y

    init = tuple(jnp.zeros((B, H), jnp.float32) for _ in range(4))
    _, ys = jax.lax.scan(step, init, jnp.transpose(x, (1, 0, 2)))
    return jnp.transpose(ys, (1, 0, 2))


if __name__ == "__main__":
    B, T, H = 8, 8, 64
    key = jax.random.PRNGKey(0)
    k_x, k_p = jax.random.split(key)
    x = jax.random.normal(k_x, (B, T, 2), jnp.float32)
    params = init_params(k_p, hidden_size=H)

    # One-time weight preprocessing, outside the jitted per-call forward.
    prepped = jax.tree_util.tree_map(jnp.asarray, prepare_params(params))

    out = trajectory_predictor(x, prepped)
    out = jax.block_until_ready(out)

    ref = _reference(x, params)
    assert out.shape == (B, T, 2)
    assert jnp.allclose(out, ref, atol=1e-4, rtol=1e-4), "mismatch vs reference"
    print("KERNEL_OK")
</pallas_src>

<mosaic_0001>
module attributes {stable_mosaic.version = 11 : i64} {
  func.func @_lstm_kernel(%arg0: i32, %arg1: memref<8x8x256xf32, #tpu.memory_space<vmem>>, %arg2: memref<64x256xf32, #tpu.memory_space<vmem>>, %arg3: memref<64x256xf32, #tpu.memory_space<vmem>>, %arg4: memref<64x256xf32, #tpu.memory_space<vmem>>, %arg5: memref<1x256xf32, #tpu.memory_space<vmem>>, %arg6: memref<8x8x64xf32, #tpu.memory_space<vmem>>) attributes {dimension_semantics = [#tpu.dimension_semantics<arbitrary>], iteration_bounds = array<i64: 1>, scalar_prefetch = 0 : i64, scratch_operands = 0 : i64, tpu.core_type = #tpu.core_type<tc>, window_params = [{pipeline_mode = #tpu.pipeline_mode<synchronous>, transform_indices = @transform_0, window_bounds = array<i64: 8, 8, 256>}, {pipeline_mode = #tpu.pipeline_mode<synchronous>, transform_indices = @transform_1, window_bounds = array<i64: 64, 256>}, {pipeline_mode = #tpu.pipeline_mode<synchronous>, transform_indices = @transform_2, window_bounds = array<i64: 64, 256>}, {pipeline_mode = #tpu.pipeline_mode<synchronous>, transform_indices = @transform_3, window_bounds = array<i64: 64, 256>}, {pipeline_mode = #tpu.pipeline_mode<synchronous>, transform_indices = @transform_4, window_bounds = array<i64: 1, 256>}, {pipeline_mode = #tpu.pipeline_mode<synchronous>, transform_indices = @transform_5, window_bounds = array<i64: 8, 8, 64>}]} {
    %c0 = arith.constant 0 : index
    %c0_0 = arith.constant 0 : index
    %0 = vector.load %arg5[%c0, %c0_0] : memref<1x256xf32, #tpu.memory_space<vmem>>, vector<1x256xf32>
    %1 = vector.shape_cast %0 : vector<1x256xf32> to vector<1x256xf32>
    %2 = vector.broadcast %1 : vector<1x256xf32> to vector<8x256xf32>
    %cst = arith.constant 0.000000e+00 : f32
    %3 = vector.broadcast %cst : f32 to vector<8x64xf32>
    %c0_i32 = arith.constant 0 : i32
    %c0_1 = arith.constant 0 : index
    %c0_2 = arith.constant 0 : index
    %4 = vector.load %arg4[%c0_1, %c0_2] : memref<64x256xf32, #tpu.memory_space<vmem>>, vector<64x256xf32>
    %cst_3 = arith.constant dense<0.000000e+00> : vector<8x256xf32>
    %5 = tpu.matmul %3, %4, %cst_3 {dimension_numbers = #tpu.dot_dimension_numbers<[1], [0], [0], [1], [0, 0, 1, 1], [], []>} : vector<8x64xf32>, vector<64x256xf32>, vector<8x256xf32> -> vector<8x256xf32>
    %6 = arith.addf %5, %2 : vector<8x256xf32>
    %7 = arith.index_cast %c0_i32 : i32 to index
    %c0_4 = arith.constant 0 : index
    %c0_5 = arith.constant 0 : index
    %8 = vector.load %arg1[%7, %c0_4, %c0_5] : memref<8x8x256xf32, #tpu.memory_space<vmem>>, vector<1x8x256xf32>
    %9 = vector.shape_cast %8 : vector<1x8x256xf32> to vector<8x256xf32>
    %c0_6 = arith.constant 0 : index
    %c0_7 = arith.constant 0 : index
    %10 = vector.load %arg2[%c0_6, %c0_7] : memref<64x256xf32, #tpu.memory_space<vmem>>, vector<64x256xf32>
    %cst_8 = arith.constant dense<0.000000e+00> : vector<8x256xf32>
    %11 = tpu.matmul %3, %10, %cst_8 {dimension_numbers = #tpu.dot_dimension_numbers<[1], [0], [0], [1], [0, 0, 1, 1], [], []>} : vector<8x64xf32>, vector<64x256xf32>, vector<8x256xf32> -> vector<8x256xf32>
    %12 = arith.addf %9, %11 : vector<8x256xf32>
    %13 = vector.extract_strided_slice %12 {offsets = [0, 0], sizes = [8, 192], strides = [1, 1]} : vector<8x256xf32> to vector<8x192xf32>
    %14 = arith.negf %13 : vector<8x192xf32>
    %15 = math.exp %14 : vector<8x192xf32>
    %cst_9 = arith.constant 1.000000e+00 : f32
    %16 = vector.broadcast %cst_9 : f32 to vector<8x192xf32>
    %17 = arith.addf %16, %15 : vector<8x192xf32>
    %18 = arith.divf %16, %17 : vector<8x192xf32>
    %19 = vector.extract_strided_slice %12 {offsets = [0, 192], sizes = [8, 64], strides = [1, 1]} : vector<8x256xf32> to vector<8x64xf32>
    %20 = math.tanh %19 : vector<8x64xf32>
    %21 = vector.extract_strided_slice %18 {offsets = [0, 0], sizes = [8, 64], strides = [1, 1]} : vector<8x192xf32> to vector<8x64xf32>
    %22 = vector.extract_strided_slice %18 {offsets = [0, 64], sizes = [8, 64], strides = [1, 1]} : vector<8x192xf32> to vector<8x64xf32>
    %23 = vector.extract_strided_slice %18 {offsets = [0, 128], sizes = [8, 64], strides = [1, 1]} : vector<8x192xf32> to vector<8x64xf32>
    %24 = arith.mulf %22, %3 : vector<8x64xf32>
    %25 = arith.mulf %21, %20 : vector<8x64xf32>
    %26 = arith.addf %24, %25 : vector<8x64xf32>
    %27 = math.tanh %26 : vector<8x64xf32>
    %28 = arith.mulf %23, %27 : vector<8x64xf32>
    %c0_10 = arith.constant 0 : index
    %c0_11 = arith.constant 0 : index
    %29 = vector.load %arg3[%c0_10, %c0_11] : memref<64x256xf32, #tpu.memory_space<vmem>>, vector<64x256xf32>
    %cst_12 = arith.constant dense<0.000000e+00> : vector<8x256xf32>
    %30 = tpu.matmul %28, %29, %cst_12 {dimension_numbers = #tpu.dot_dimension_numbers<[1], [0], [0], [1], [0, 0, 1, 1], [], []>} : vector<8x64xf32>, vector<64x256xf32>, vector<8x256xf32> -> vector<8x256xf32>
    %31 = arith.addf %6, %30 : vector<8x256xf32>
    %32 = vector.extract_strided_slice %31 {offsets = [0, 0], sizes = [8, 192], strides = [1, 1]} : vector<8x256xf32> to vector<8x192xf32>
    %33 = arith.negf %32 : vector<8x192xf32>
    %34 = math.exp %33 : vector<8x192xf32>
    %cst_13 = arith.constant 1.000000e+00 : f32
    %35 = vector.broadcast %cst_13 : f32 to vector<8x192xf32>
    %36 = arith.addf %35, %34 : vector<8x192xf32>
    %37 = arith.divf %35, %36 : vector<8x192xf32>
    %38 = vector.extract_strided_slice %31 {offsets = [0, 192], sizes = [8, 64], strides = [1, 1]} : vector<8x256xf32> to vector<8x64xf32>
    %39 = math.tanh %38 : vector<8x64xf32>
    %40 = vector.extract_strided_slice %37 {offsets = [0, 0], sizes = [8, 64], strides = [1, 1]} : vector<8x192xf32> to vector<8x64xf32>
    %41 = vector.extract_strided_slice %37 {offsets = [0, 64], sizes = [8, 64], strides = [1, 1]} : vector<8x192xf32> to vector<8x64xf32>
    %42 = vector.extract_strided_slice %37 {offsets = [0, 128], sizes = [8, 64], strides = [1, 1]} : vector<8x192xf32> to vector<8x64xf32>
    %43 = arith.mulf %41, %3 : vector<8x64xf32>
    %44 = arith.mulf %40, %39 : vector<8x64xf32>
    %45 = arith.addf %43, %44 : vector<8x64xf32>
    %46 = math.tanh %45 : vector<8x64xf32>
    %47 = arith.mulf %42, %46 : vector<8x64xf32>
    %48 = arith.index_cast %c0_i32 : i32 to index
    %c0_14 = arith.constant 0 : index
    %c0_15 = arith.constant 0 : index
    %49 = vector.load %arg6[%48, %c0_14, %c0_15] : memref<8x8x64xf32, #tpu.memory_space<vmem>>, vector<1x8x64xf32>
    %50 = vector.shape_cast %49 : vector<1x8x64xf32> to vector<8x64xf32>
    %51 = vector.shape_cast %47 : vector<8x64xf32> to vector<1x8x64xf32>
    tpu.vector_store %arg6[%48, %c0_14, %c0_15], %51 {strides = array<i32>} : memref<8x8x64xf32, #tpu.memory_space<vmem>>, vector<1x8x64xf32>,
    %c1_i32 = arith.constant 1 : i32
    %c0_16 = arith.constant 0 : index
    %c0_17 = arith.constant 0 : index
    %52 = vector.load %arg4[%c0_16, %c0_17] : memref<64x256xf32, #tpu.memory_space<vmem>>, vector<64x256xf32>
    %cst_18 = arith.constant dense<0.000000e+00> : vector<8x256xf32>
    %53 = tpu.matmul %47, %52, %cst_18 {dimension_numbers = #tpu.dot_dimension_numbers<[1], [0], [0], [1], [0, 0, 1, 1], [], []>} : vector<8x64xf32>, vector<64x256xf32>, vector<8x256xf32> -> vector<8x256xf32>
    %54 = arith.addf %53, %2 : vector<8x256xf32>
    %55 = arith.index_cast %c1_i32 : i32 to index
    %c0_19 = arith.constant 0 : index
    %c0_20 = arith.constant 0 : index
    %56 = vector.load %arg1[%55, %c0_19, %c0_20] : memref<8x8x256xf32, #tpu.memory_space<vmem>>, vector<1x8x256xf32>
    %57 = vector.shape_cast %56 : vector<1x8x256xf32> to vector<8x256xf32>
    %c0_21 = arith.constant 0 : index
    %c0_22 = arith.constant 0 : index
    %58 = vector.load %arg2[%c0_21, %c0_22] : memref<64x256xf32, #tpu.memory_space<vmem>>, vector<64x256xf32>
    %cst_23 = arith.constant dense<0.000000e+00> : vector<8x256xf32>
    %59 = tpu.matmul %28, %58, %cst_23 {dimension_numbers = #tpu.dot_dimension_numbers<[1], [0], [0], [1], [0, 0, 1, 1], [], []>} : vector<8x64xf32>, vector<64x256xf32>, vector<8x256xf32> -> vector<8x256xf32>
    %60 = arith.addf %57, %59 : vector<8x256xf32>
    %61 = vector.extract_strided_slice %60 {offsets = [0, 0], sizes = [8, 192], strides = [1, 1]} : vector<8x256xf32> to vector<8x192xf32>
    %62 = arith.negf %61 : vector<8x192xf32>
    %63 = math.exp %62 : vector<8x192xf32>
    %cst_24 = arith.constant 1.000000e+00 : f32
    %64 = vector.broadcast %cst_24 : f32 to vector<8x192xf32>
    %65 = arith.addf %64, %63 : vector<8x192xf32>
    %66 = arith.divf %64, %65 : vector<8x192xf32>
    %67 = vector.extract_strided_slice %60 {offsets = [0, 192], sizes = [8, 64], strides = [1, 1]} : vector<8x256xf32> to vector<8x64xf32>
    %68 = math.tanh %67 : vector<8x64xf32>
    %69 = vector.extract_strided_slice %66 {offsets = [0, 0], sizes = [8, 64], strides = [1, 1]} : vector<8x192xf32> to vector<8x64xf32>
    %70 = vector.extract_strided_slice %66 {offsets = [0, 64], sizes = [8, 64], strides = [1, 1]} : vector<8x192xf32> to vector<8x64xf32>
    %71 = vector.extract_strided_slice %66 {offsets = [0, 128], sizes = [8, 64], strides = [1, 1]} : vector<8x192xf32> to vector<8x64xf32>
    %72 = arith.mulf %70, %26 : vector<8x64xf32>
    %73 = arith.mulf %69, %68 : vector<8x64xf32>
    %74 = arith.addf %72, %73 : vector<8x64xf32>
    %75 = math.tanh %74 : vector<8x64xf32>
    %76 = arith.mulf %71, %75 : vector<8x64xf32>
    %c0_25 = arith.constant 0 : index
    %c0_26 = arith.constant 0 : index
    %77 = vector.load %arg3[%c0_25, %c0_26] : memref<64x256xf32, #tpu.memory_space<vmem>>, vector<64x256xf32>
    %cst_27 = arith.constant dense<0.000000e+00> : vector<8x256xf32>
    %78 = tpu.matmul %76, %77, %cst_27 {dimension_numbers = #tpu.dot_dimension_numbers<[1], [0], [0], [1], [0, 0, 1, 1], [], []>} : vector<8x64xf32>, vector<64x256xf32>, vector<8x256xf32> -> vector<8x256xf32>
    %79 = arith.addf %54, %78 : vector<8x256xf32>
    %80 = vector.extract_strided_slice %79 {offsets = [0, 0], sizes = [8, 192], strides = [1, 1]} : vector<8x256xf32> to vector<8x192xf32>
    %81 = arith.negf %80 : vector<8x192xf32>
    %82 = math.exp %81 : vector<8x192xf32>
    %cst_28 = arith.constant 1.000000e+00 : f32
    %83 = vector.broadcast %cst_28 : f32 to vector<8x192xf32>
    %84 = arith.addf %83, %82 : vector<8x192xf32>
    %85 = arith.divf %83, %84 : vector<8x192xf32>
    %86 = vector.extract_strided_slice %79 {offsets = [0, 192], sizes = [8, 64], strides = [1, 1]} : vector<8x256xf32> to vector<8x64xf32>
    %87 = math.tanh %86 : vector<8x64xf32>
    %88 = vector.extract_strided_slice %85 {offsets = [0, 0], sizes = [8, 64], strides = [1, 1]} : vector<8x192xf32> to vector<8x64xf32>
    %89 = vector.extract_strided_slice %85 {offsets = [0, 64], sizes = [8, 64], strides = [1, 1]} : vector<8x192xf32> to vector<8x64xf32>
    %90 = vector.extract_strided_slice %85 {offsets = [0, 128], sizes = [8, 64], strides = [1, 1]} : vector<8x192xf32> to vector<8x64xf32>
    %91 = arith.mulf %89, %45 : vector<8x64xf32>
    %92 = arith.mulf %88, %87 : vector<8x64xf32>
    %93 = arith.addf %91, %92 : vector<8x64xf32>
    %94 = math.tanh %93 : vector<8x64xf32>
    %95 = arith.mulf %90, %94 : vector<8x64xf32>
    %96 = arith.index_cast %c1_i32 : i32 to index
    %c0_29 = arith.constant 0 : index
    %c0_30 = arith.constant 0 : index
    %97 = vector.load %arg6[%96, %c0_29, %c0_30] : memref<8x8x64xf32, #tpu.memory_space<vmem>>, vector<1x8x64xf32>
    %98 = vector.shape_cast %97 : vector<1x8x64xf32> to vector<8x64xf32>
    %99 = vector.shape_cast %95 : vector<8x64xf32> to vector<1x8x64xf32>
    tpu.vector_store %arg6[%96, %c0_29, %c0_30], %99 {strides = array<i32>} : memref<8x8x64xf32, #tpu.memory_space<vmem>>, vector<1x8x64xf32>,
    %c2_i32 = arith.constant 2 : i32
    %c0_31 = arith.constant 0 : index
    %c0_32 = arith.constant 0 : index
    %100 = vector.load %arg4[%c0_31, %c0_32] : memref<64x256xf32, #tpu.memory_space<vmem>>, vector<64x256xf32>
    %cst_33 = arith.constant dense<0.000000e+00> : vector<8x256xf32>
    %101 = tpu.matmul %95, %100, %cst_33 {dimension_numbers = #tpu.dot_dimension_numbers<[1], [0], [0], [1], [0, 0, 1, 1], [], []>} : vector<8x64xf32>, vector<64x256xf32>, vector<8x256xf32> -> vector<8x256xf32>
    %102 = arith.addf %101, %2 : vector<8x256xf32>
    %103 = arith.index_cast %c2_i32 : i32 to index
    %c0_34 = arith.constant 0 : index
    %c0_35 = arith.constant 0 : index
    %104 = vector.load %arg1[%103, %c0_34, %c0_35] : memref<8x8x256xf32, #tpu.memory_space<vmem>>, vector<1x8x256xf32>
    %105 = vector.shape_cast %104 : vector<1x8x256xf32> to vector<8x256xf32>
    %c0_36 = arith.constant 0 : index
    %c0_37 = arith.constant 0 : index
    %106 = vector.load %arg2[%c0_36, %c0_37] : memref<64x256xf32, #tpu.memory_space<vmem>>, vector<64x256xf32>
    %cst_38 = arith.constant dense<0.000000e+00> : vector<8x256xf32>
    %107 = tpu.matmul %76, %106, %cst_38 {dimension_numbers = #tpu.dot_dimension_numbers<[1], [0], [0], [1], [0, 0, 1, 1], [], []>} : vector<8x64xf32>, vector<64x256xf32>, vector<8x256xf32> -> vector<8x256xf32>
    %108 = arith.addf %105, %107 : vector<8x256xf32>
    %109 = vector.extract_strided_slice %108 {offsets = [0, 0], sizes = [8, 192], strides = [1, 1]} : vector<8x256xf32> to vector<8x192xf32>
    %110 = arith.negf %109 : vector<8x192xf32>
    %111 = math.exp %110 : vector<8x192xf32>
    %cst_39 = arith.constant 1.000000e+00 : f32
    %112 = vector.broadcast %cst_39 : f32 to vector<8x192xf32>
    %113 = arith.addf %112, %111 : vector<8x192xf32>
    %114 = arith.divf %112, %113 : vector<8x192xf32>
    %115 = vector.extract_strided_slice %108 {offsets = [0, 192], sizes = [8, 64], strides = [1, 1]} : vector<8x256xf32> to vector<8x64xf32>
    %116 = math.tanh %115 : vector<8x64xf32>
    %117 = vector.extract_strided_slice %114 {offsets = [0, 0], sizes = [8, 64], strides = [1, 1]} : vector<8x192xf32> to vector<8x64xf32>
    %118 = vector.extract_strided_slice %114 {offsets = [0, 64], sizes = [8, 64], strides = [1, 1]} : vector<8x192xf32> to vector<8x64xf32>
    %119 = vector.extract_strided_slice %114 {offsets = [0, 128], sizes = [8, 64], strides = [1, 1]} : vector<8x192xf32> to vector<8x64xf32>
    %120 = arith.mulf %118, %74 : vector<8x64xf32>
    %121 = arith.mulf %117, %116 : vector<8x64xf32>
    %122 = arith.addf %120, %121 : vector<8x64xf32>
    %123 = math.tanh %122 : vector<8x64xf32>
    %124 = arith.mulf %119, %123 : vector<8x64xf32>
    %c0_40 = arith.constant 0 : index
    %c0_41 = arith.constant 0 : index
    %125 = vector.load %arg3[%c0_40, %c0_41] : memref<64x256xf32, #tpu.memory_space<vmem>>, vector<64x256xf32>
    %cst_42 = arith.constant dense<0.000000e+00> : vector<8x256xf32>
    %126 = tpu.matmul %124, %125, %cst_42 {dimension_numbers = #tpu.dot_dimension_numbers<[1], [0], [0], [1], [0, 0, 1, 1], [], []>} : vector<8x64xf32>, vector<64x256xf32>, vector<8x256xf32> -> vector<8x256xf32>
    %127 = arith.addf %102, %126 : vector<8x256xf32>
    %128 = vector.extract_strided_slice %127 {offsets = [0, 0], sizes = [8, 192], strides = [1, 1]} : vector<8x256xf32> to vector<8x192xf32>
    %129 = arith.negf %128 : vector<8x192xf32>
    %130 = math.exp %129 : vector<8x192xf32>
    %cst_43 = arith.constant 1.000000e+00 : f32
    %131 = vector.broadcast %cst_43 : f32 to vector<8x192xf32>
    %132 = arith.addf %131, %130 : vector<8x192xf32>
    %133 = arith.divf %131, %132 : vector<8x192xf32>
    %134 = vector.extract_strided_slice %127 {offsets = [0, 192], sizes = [8, 64], strides = [1, 1]} : vector<8x256xf32> to vector<8x64xf32>
    %135 = math.tanh %134 : vector<8x64xf32>
    %136 = vector.extract_strided_slice %133 {offsets = [0, 0], sizes = [8, 64], strides = [1, 1]} : vector<8x192xf32> to vector<8x64xf32>
    %137 = vector.extract_strided_slice %133 {offsets = [0, 64], sizes = [8, 64], strides = [1, 1]} : vector<8x192xf32> to vector<8x64xf32>
    %138 = vector.extract_strided_slice %133 {offsets = [0, 128], sizes = [8, 64], strides = [1, 1]} : vector<8x192xf32> to vector<8x64xf32>
    %139 = arith.mulf %137, %93 : vector<8x64xf32>
    %140 = arith.mulf %136, %135 : vector<8x64xf32>
    %141 = arith.addf %139, %140 : vector<8x64xf32>
    %142 = math.tanh %141 : vector<8x64xf32>
    %143 = arith.mulf %138, %142 : vector<8x64xf32>
    %144 = arith.index_cast %c2_i32 : i32 to index
    %c0_44 = arith.constant 0 : index
    %c0_45 = arith.constant 0 : index
    %145 = vector.load %arg6[%144, %c0_44, %c0_45] : memref<8x8x64xf32, #tpu.memory_space<vmem>>, vector<1x8x64xf32>
    %146 = vector.shape_cast %145 : vector<1x8x64xf32> to vector<8x64xf32>
    %147 = vector.shape_cast %143 : vector<8x64xf32> to vector<1x8x64xf32>
    tpu.vector_store %arg6[%144, %c0_44, %c0_45], %147 {strides = array<i32>} : memref<8x8x64xf32, #tpu.memory_space<vmem>>, vector<1x8x64xf32>,
    %c3_i32 = arith.constant 3 : i32
    %c0_46 = arith.constant 0 : index
    %c0_47 = arith.constant 0 : index
    %148 = vector.load %arg4[%c0_46, %c0_47] : memref<64x256xf32, #tpu.memory_space<vmem>>, vector<64x256xf32>
    %cst_48 = arith.constant dense<0.000000e+00> : vector<8x256xf32>
    %149 = tpu.matmul %143, %148, %cst_48 {dimension_numbers = #tpu.dot_dimension_numbers<[1], [0], [0], [1], [0, 0, 1, 1], [], []>} : vector<8x64xf32>, vector<64x256xf32>, vector<8x256xf32> -> vector<8x256xf32>
    %150 = arith.addf %149, %2 : vector<8x256xf32>
    %151 = arith.index_cast %c3_i32 : i32 to index
    %c0_49 = arith.constant 0 : index
    %c0_50 = arith.constant 0 : index
    %152 = vector.load %arg1[%151, %c0_49, %c0_50] : memref<8x8x256xf32, #tpu.memory_space<vmem>>, vector<1x8x256xf32>
    %153 = vector.shape_cast %152 : vector<1x8x256xf32> to vector<8x256xf32>
    %c0_51 = arith.constant 0 : index
    %c0_52 = arith.constant 0 : index
    %154 = vector.load %arg2[%c0_51, %c0_52] : memref<64x256xf32, #tpu.memory_space<vmem>>, vector<64x256xf32>
    %cst_53 = arith.constant dense<0.000000e+00> : vector<8x256xf32>
    %155 = tpu.matmul %124, %154, %cst_53 {dimension_numbers = #tpu.dot_dimension_numbers<[1], [0], [0], [1], [0, 0, 1, 1], [], []>} : vector<8x64xf32>, vector<64x256xf32>, vector<8x256xf32> -> vector<8x256xf32>
    %156 = arith.addf %153, %155 : vector<8x256xf32>
    %157 = vector.extract_strided_slice %156 {offsets = [0, 0], sizes = [8, 192], strides = [1, 1]} : vector<8x256xf32> to vector<8x192xf32>
    %158 = arith.negf %157 : vector<8x192xf32>
    %159 = math.exp %158 : vector<8x192xf32>
    %cst_54 = arith.constant 1.000000e+00 : f32
    %160 = vector.broadcast %cst_54 : f32 to vector<8x192xf32>
    %161 = arith.addf %160, %159 : vector<8x192xf32>
    %162 = arith.divf %160, %161 : vector<8x192xf32>
    %163 = vector.extract_strided_slice %156 {offsets = [0, 192], sizes = [8, 64], strides = [1, 1]} : vector<8x256xf32> to vector<8x64xf32>
    %164 = math.tanh %163 : vector<8x64xf32>
    %165 = vector.extract_strided_slice %162 {offsets = [0, 0], sizes = [8, 64], strides = [1, 1]} : vector<8x192xf32> to vector<8x64xf32>
    %166 = vector.extract_strided_slice %162 {offsets = [0, 64], sizes = [8, 64], strides = [1, 1]} : vector<8x192xf32> to vector<8x64xf32>
    %167 = vector.extract_strided_slice %162 {offsets = [0, 128], sizes = [8, 64], strides = [1, 1]} : vector<8x192xf32> to vector<8x64xf32>
    %168 = arith.mulf %166, %122 : vector<8x64xf32>
    %169 = arith.mulf %165, %164 : vector<8x64xf32>
    %170 = arith.addf %168, %169 : vector<8x64xf32>
    %171 = math.tanh %170 : vector<8x64xf32>
    %172 = arith.mulf %167, %171 : vector<8x64xf32>
    %c0_55 = arith.constant 0 : index
    %c0_56 = arith.constant 0 : index
    %173 = vector.load %arg3[%c0_55, %c0_56] : memref<64x256xf32, #tpu.memory_space<vmem>>, vector<64x256xf32>
    %cst_57 = arith.constant dense<0.000000e+00> : vector<8x256xf32>
    %174 = tpu.matmul %172, %173, %cst_57 {dimension_numbers = #tpu.dot_dimension_numbers<[1], [0], [0], [1], [0, 0, 1, 1], [], []>} : vector<8x64xf32>, vector<64x256xf32>, vector<8x256xf32> -> vector<8x256xf32>
    %175 = arith.addf %150, %174 : vector<8x256xf32>
    %176 = vector.extract_strided_slice %175 {offsets = [0, 0], sizes = [8, 192], strides = [1, 1]} : vector<8x256xf32> to vector<8x192xf32>
    %177 = arith.negf %176 : vector<8x192xf32>
    %178 = math.exp %177 : vector<8x192xf32>
    %cst_58 = arith.constant 1.000000e+00 : f32
    %179 = vector.broadcast %cst_58 : f32 to vector<8x192xf32>
    %180 = arith.addf %179, %178 : vector<8x192xf32>
    %181 = arith.divf %179, %180 : vector<8x192xf32>
    %182 = vector.extract_strided_slice %175 {offsets = [0, 192], sizes = [8, 64], strides = [1, 1]} : vector<8x256xf32> to vector<8x64xf32>
    %183 = math.tanh %182 : vector<8x64xf32>
    %184 = vector.extract_strided_slice %181 {offsets = [0, 0], sizes = [8, 64], strides = [1, 1]} : vector<8x192xf32> to vector<8x64xf32>
    %185 = vector.extract_strided_slice %181 {offsets = [0, 64], sizes = [8, 64], strides = [1, 1]} : vector<8x192xf32> to vector<8x64xf32>
    %186 = vector.extract_strided_slice %181 {offsets = [0, 128], sizes = [8, 64], strides = [1, 1]} : vector<8x192xf32> to vector<8x64xf32>
    %187 = arith.mulf %185, %141 : vector<8x64xf32>
    %188 = arith.mulf %184, %183 : vector<8x64xf32>
    %189 = arith.addf %187, %188 : vector<8x64xf32>
    %190 = math.tanh %189 : vector<8x64xf32>
    %191 = arith.mulf %186, %190 : vector<8x64xf32>
    %192 = arith.index_cast %c3_i32 : i32 to index
    %c0_59 = arith.constant 0 : index
    %c0_60 = arith.constant 0 : index
    %193 = vector.load %arg6[%192, %c0_59, %c0_60] : memref<8x8x64xf32, #tpu.memory_space<vmem>>, vector<1x8x64xf32>
    %194 = vector.shape_cast %193 : vector<1x8x64xf32> to vector<8x64xf32>
    %195 = vector.shape_cast %191 : vector<8x64xf32> to vector<1x8x64xf32>
    tpu.vector_store %arg6[%192, %c0_59, %c0_60], %195 {strides = array<i32>} : memref<8x8x64xf32, #tpu.memory_space<vmem>>, vector<1x8x64xf32>,
    %c4_i32 = arith.constant 4 : i32
    %c0_61 = arith.constant 0 : index
    %c0_62 = arith.constant 0 : index
    %196 = vector.load %arg4[%c0_61, %c0_62] : memref<64x256xf32, #tpu.memory_space<vmem>>, vector<64x256xf32>
    %cst_63 = arith.constant dense<0.000000e+00> : vector<8x256xf32>
    %197 = tpu.matmul %191, %196, %cst_63 {dimension_numbers = #tpu.dot_dimension_numbers<[1], [0], [0], [1], [0, 0, 1, 1], [], []>} : vector<8x64xf32>, vector<64x256xf32>, vector<8x256xf32> -> vector<8x256xf32>
    %198 = arith.addf %197, %2 : vector<8x256xf32>
    %199 = arith.index_cast %c4_i32 : i32 to index
    %c0_64 = arith.constant 0 : index
    %c0_65 = arith.constant 0 : index
    %200 = vector.load %arg1[%199, %c0_64, %c0_65] : memref<8x8x256xf32, #tpu.memory_space<vmem>>, vector<1x8x256xf32>
    %201 = vector.shape_cast %200 : vector<1x8x256xf32> to vector<8x256xf32>
    %c0_66 = arith.constant 0 : index
    %c0_67 = arith.constant 0 : index
    %202 = vector.load %arg2[%c0_66, %c0_67] : memref<64x256xf32, #tpu.memory_space<vmem>>, vector<64x256xf32>
    %cst_68 = arith.constant dense<0.000000e+00> : vector<8x256xf32>
    %203 = tpu.matmul %172, %202, %cst_68 {dimension_numbers = #tpu.dot_dimension_numbers<[1], [0], [0], [1], [0, 0, 1, 1], [], []>} : vector<8x64xf32>, vector<64x256xf32>, vector<8x256xf32> -> vector<8x256xf32>
    %204 = arith.addf %201, %203 : vector<8x256xf32>
    %205 = vector.extract_strided_slice %204 {offsets = [0, 0], sizes = [8, 192], strides = [1, 1]} : vector<8x256xf32> to vector<8x192xf32>
    %206 = arith.negf %205 : vector<8x192xf32>
    %207 = math.exp %206 : vector<8x192xf32>
    %cst_69 = arith.constant 1.000000e+00 : f32
    %208 = vector.broadcast %cst_69 : f32 to vector<8x192xf32>
    %209 = arith.addf %208, %207 : vector<8x192xf32>
    %210 = arith.divf %208, %209 : vector<8x192xf32>
    %211 = vector.extract_strided_slice %204 {offsets = [0, 192], sizes = [8, 64], strides = [1, 1]} : vector<8x256xf32> to vector<8x64xf32>
    %212 = math.tanh %211 : vector<8x64xf32>
    %213 = vector.extract_strided_slice %210 {offsets = [0, 0], sizes = [8, 64], strides = [1, 1]} : vector<8x192xf32> to vector<8x64xf32>
    %214 = vector.extract_strided_slice %210 {offsets = [0, 64], sizes = [8, 64], strides = [1, 1]} : vector<8x192xf32> to vector<8x64xf32>
    %215 = vector.extract_strided_slice %210 {offsets = [0, 128], sizes = [8, 64], strides = [1, 1]} : vector<8x192xf32> to vector<8x64xf32>
    %216 = arith.mulf %214, %170 : vector<8x64xf32>
    %217 = arith.mulf %213, %212 : vector<8x64xf32>
    %218 = arith.addf %216, %217 : vector<8x64xf32>
    %219 = math.tanh %218 : vector<8x64xf32>
    %220 = arith.mulf %215, %219 : vector<8x64xf32>
    %c0_70 = arith.constant 0 : index
    %c0_71 = arith.constant 0 : index
    %221 = vector.load %arg3[%c0_70, %c0_71] : memref<64x256xf32, #tpu.memory_space<vmem>>, vector<64x256xf32>
    %cst_72 = arith.constant dense<0.000000e+00> : vector<8x256xf32>
    %222 = tpu.matmul %220, %221, %cst_72 {dimension_numbers = #tpu.dot_dimension_numbers<[1], [0], [0], [1], [0, 0, 1, 1], [], []>} : vector<8x64xf32>, vector<64x256xf32>, vector<8x256xf32> -> vector<8x256xf32>
    %223 = arith.addf %198, %222 : vector<8x256xf32>
    %224 = vector.extract_strided_slice %223 {offsets = [0, 0], sizes = [8, 192], strides = [1, 1]} : vector<8x256xf32> to vector<8x192xf32>
    %225 = arith.negf %224 : vector<8x192xf32>
    %226 = math.exp %225 : vector<8x192xf32>
    %cst_73 = arith.constant 1.000000e+00 : f32
    %227 = vector.broadcast %cst_73 : f32 to vector<8x192xf32>
    %228 = arith.addf %227, %226 : vector<8x192xf32>
    %229 = arith.divf %227, %228 : vector<8x192xf32>
    %230 = vector.extract_strided_slice %223 {offsets = [0, 192], sizes = [8, 64], strides = [1, 1]} : vector<8x256xf32> to vector<8x64xf32>
    %231 = math.tanh %230 : vector<8x64xf32>
    %232 = vector.extract_strided_slice %229 {offsets = [0, 0], sizes = [8, 64], strides = [1, 1]} : vector<8x192xf32> to vector<8x64xf32>
    %233 = vector.extract_strided_slice %229 {offsets = [0, 64], sizes = [8, 64], strides = [1, 1]} : vector<8x192xf32> to vector<8x64xf32>
    %234 = vector.extract_strided_slice %229 {offsets = [0, 128], sizes = [8, 64], strides = [1, 1]} : vector<8x192xf32> to vector<8x64xf32>
    %235 = arith.mulf %233, %189 : vector<8x64xf32>
    %236 = arith.mulf %232, %231 : vector<8x64xf32>
    %237 = arith.addf %235, %236 : vector<8x64xf32>
    %238 = math.tanh %237 : vector<8x64xf32>
    %239 = arith.mulf %234, %238 : vector<8x64xf32>
    %240 = arith.index_cast %c4_i32 : i32 to index
    %c0_74 = arith.constant 0 : index
    %c0_75 = arith.constant 0 : index
    %241 = vector.load %arg6[%240, %c0_74, %c0_75] : memref<8x8x64xf32, #tpu.memory_space<vmem>>, vector<1x8x64xf32>
    %242 = vector.shape_cast %241 : vector<1x8x64xf32> to vector<8x64xf32>
    %243 = vector.shape_cast %239 : vector<8x64xf32> to vector<1x8x64xf32>
    tpu.vector_store %arg6[%240, %c0_74, %c0_75], %243 {strides = array<i32>} : memref<8x8x64xf32, #tpu.memory_space<vmem>>, vector<1x8x64xf32>,
    %c5_i32 = arith.constant 5 : i32
    %c0_76 = arith.constant 0 : index
    %c0_77 = arith.constant 0 : index
    %244 = vector.load %arg4[%c0_76, %c0_77] : memref<64x256xf32, #tpu.memory_space<vmem>>, vector<64x256xf32>
    %cst_78 = arith.constant dense<0.000000e+00> : vector<8x256xf32>
    %245 = tpu.matmul %239, %244, %cst_78 {dimension_numbers = #tpu.dot_dimension_numbers<[1], [0], [0], [1], [0, 0, 1, 1], [], []>} : vector<8x64xf32>, vector<64x256xf32>, vector<8x256xf32> -> vector<8x256xf32>
    %246 = arith.addf %245, %2 : vector<8x256xf32>
    %247 = arith.index_cast %c5_i32 : i32 to index
    %c0_79 = arith.constant 0 : index
    %c0_80 = arith.constant 0 : index
    %248 = vector.load %arg1[%247, %c0_79, %c0_80] : memref<8x8x256xf32, #tpu.memory_space<vmem>>, vector<1x8x256xf32>
    %249 = vector.shape_cast %248 : vector<1x8x256xf32> to vector<8x256xf32>
    %c0_81 = arith.constant 0 : index
    %c0_82 = arith.constant 0 : index
    %250 = vector.load %arg2[%c0_81, %c0_82] : memref<64x256xf32, #tpu.memory_space<vmem>>, vector<64x256xf32>
    %cst_83 = arith.constant dense<0.000000e+00> : vector<8x256xf32>
    %251 = tpu.matmul %220, %250, %cst_83 {dimension_numbers = #tpu.dot_dimension_numbers<[1], [0], [0], [1], [0, 0, 1, 1], [], []>} : vector<8x64xf32>, vector<64x256xf32>, vector<8x256xf32> -> vector<8x256xf32>
    %252 = arith.addf %249, %251 : vector<8x256xf32>
    %253 = vector.extract_strided_slice %252 {offsets = [0, 0], sizes = [8, 192], strides = [1, 1]} : vector<8x256xf32> to vector<8x192xf32>
    %254 = arith.negf %253 : vector<8x192xf32>
    %255 = math.exp %254 : vector<8x192xf32>
    %cst_84 = arith.constant 1.000000e+00 : f32
    %256 = vector.broadcast %cst_84 : f32 to vector<8x192xf32>
    %257 = arith.addf %256, %255 : vector<8x192xf32>
    %258 = arith.divf %256, %257 : vector<8x192xf32>
    %259 = vector.extract_strided_slice %252 {offsets = [0, 192], sizes = [8, 64], strides = [1, 1]} : vector<8x256xf32> to vector<8x64xf32>
    %260 = math.tanh %259 : vector<8x64xf32>
    %261 = vector.extract_strided_slice %258 {offsets = [0, 0], sizes = [8, 64], strides = [1, 1]} : vector<8x192xf32> to vector<8x64xf32>
    %262 = vector.extract_strided_slice %258 {offsets = [0, 64], sizes = [8, 64], strides = [1, 1]} : vector<8x192xf32> to vector<8x64xf32>
    %263 = vector.extract_strided_slice %258 {offsets = [0, 128], sizes = [8, 64], strides = [1, 1]} : vector<8x192xf32> to vector<8x64xf32>
    %264 = arith.mulf %262, %218 : vector<8x64xf32>
    %265 = arith.mulf %261, %260 : vector<8x64xf32>
    %266 = arith.addf %264, %265 : vector<8x64xf32>
    %267 = math.tanh %266 : vector<8x64xf32>
    %268 = arith.mulf %263, %267 : vector<8x64xf32>
    %c0_85 = arith.constant 0 : index
    %c0_86 = arith.constant 0 : index
    %269 = vector.load %arg3[%c0_85, %c0_86] : memref<64x256xf32, #tpu.memory_space<vmem>>, vector<64x256xf32>
    %cst_87 = arith.constant dense<0.000000e+00> : vector<8x256xf32>
    %270 = tpu.matmul %268, %269, %cst_87 {dimension_numbers = #tpu.dot_dimension_numbers<[1], [0], [0], [1], [0, 0, 1, 1], [], []>} : vector<8x64xf32>, vector<64x256xf32>, vector<8x256xf32> -> vector<8x256xf32>
    %271 = arith.addf %246, %270 : vector<8x256xf32>
    %272 = vector.extract_strided_slice %271 {offsets = [0, 0], sizes = [8, 192], strides = [1, 1]} : vector<8x256xf32> to vector<8x192xf32>
    %273 = arith.negf %272 : vector<8x192xf32>
    %274 = math.exp %273 : vector<8x192xf32>
    %cst_88 = arith.constant 1.000000e+00 : f32
    %275 = vector.broadcast %cst_88 : f32 to vector<8x192xf32>
    %276 = arith.addf %275, %274 : vector<8x192xf32>
    %277 = arith.divf %275, %276 : vector<8x192xf32>
    %278 = vector.extract_strided_slice %271 {offsets = [0, 192], sizes = [8, 64], strides = [1, 1]} : vector<8x256xf32> to vector<8x64xf32>
    %279 = math.tanh %278 : vector<8x64xf32>
    %280 = vector.extract_strided_slice %277 {offsets = [0, 0], sizes = [8, 64], strides = [1, 1]} : vector<8x192xf32> to vector<8x64xf32>
    %281 = vector.extract_strided_slice %277 {offsets = [0, 64], sizes = [8, 64], strides = [1, 1]} : vector<8x192xf32> to vector<8x64xf32>
    %282 = vector.extract_strided_slice %277 {offsets = [0, 128], sizes = [8, 64], strides = [1, 1]} : vector<8x192xf32> to vector<8x64xf32>
    %283 = arith.mulf %281, %237 : vector<8x64xf32>
    %284 = arith.mulf %280, %279 : vector<8x64xf32>
    %285 = arith.addf %283, %284 : vector<8x64xf32>
    %286 = math.tanh %285 : vector<8x64xf32>
    %287 = arith.mulf %282, %286 : vector<8x64xf32>
    %288 = arith.index_cast %c5_i32 : i32 to index
    %c0_89 = arith.constant 0 : index
    %c0_90 = arith.constant 0 : index
    %289 = vector.load %arg6[%288, %c0_89, %c0_90] : memref<8x8x64xf32, #tpu.memory_space<vmem>>, vector<1x8x64xf32>
    %290 = vector.shape_cast %289 : vector<1x8x64xf32> to vector<8x64xf32>
    %291 = vector.shape_cast %287 : vector<8x64xf32> to vector<1x8x64xf32>
    tpu.vector_store %arg6[%288, %c0_89, %c0_90], %291 {strides = array<i32>} : memref<8x8x64xf32, #tpu.memory_space<vmem>>, vector<1x8x64xf32>,
    %c6_i32 = arith.constant 6 : i32
    %c0_91 = arith.constant 0 : index
    %c0_92 = arith.constant 0 : index
    %292 = vector.load %arg4[%c0_91, %c0_92] : memref<64x256xf32, #tpu.memory_space<vmem>>, vector<64x256xf32>
    %cst_93 = arith.constant dense<0.000000e+00> : vector<8x256xf32>
    %293 = tpu.matmul %287, %292, %cst_93 {dimension_numbers = #tpu.dot_dimension_numbers<[1], [0], [0], [1], [0, 0, 1, 1], [], []>} : vector<8x64xf32>, vector<64x256xf32>, vector<8x256xf32> -> vector<8x256xf32>
    %294 = arith.addf %293, %2 : vector<8x256xf32>
    %295 = arith.index_cast %c6_i32 : i32 to index
    %c0_94 = arith.constant 0 : index
    %c0_95 = arith.constant 0 : index
    %296 = vector.load %arg1[%295, %c0_94, %c0_95] : memref<8x8x256xf32, #tpu.memory_space<vmem>>, vector<1x8x256xf32>
    %297 = vector.shape_cast %296 : vector<1x8x256xf32> to vector<8x256xf32>
    %c0_96 = arith.constant 0 : index
    %c0_97 = arith.constant 0 : index
    %298 = vector.load %arg2[%c0_96, %c0_97] : memref<64x256xf32, #tpu.memory_space<vmem>>, vector<64x256xf32>
    %cst_98 = arith.constant dense<0.000000e+00> : vector<8x256xf32>
    %299 = tpu.matmul %268, %298, %cst_98 {dimension_numbers = #tpu.dot_dimension_numbers<[1], [0], [0], [1], [0, 0, 1, 1], [], []>} : vector<8x64xf32>, vector<64x256xf32>, vector<8x256xf32> -> vector<8x256xf32>
    %300 = arith.addf %297, %299 : vector<8x256xf32>
    %301 = vector.extract_strided_slice %300 {offsets = [0, 0], sizes = [8, 192], strides = [1, 1]} : vector<8x256xf32> to vector<8x192xf32>
    %302 = arith.negf %301 : vector<8x192xf32>
    %303 = math.exp %302 : vector<8x192xf32>
    %cst_99 = arith.constant 1.000000e+00 : f32
    %304 = vector.broadcast %cst_99 : f32 to vector<8x192xf32>
    %305 = arith.addf %304, %303 : vector<8x192xf32>
    %306 = arith.divf %304, %305 : vector<8x192xf32>
    %307 = vector.extract_strided_slice %300 {offsets = [0, 192], sizes = [8, 64], strides = [1, 1]} : vector<8x256xf32> to vector<8x64xf32>
    %308 = math.tanh %307 : vector<8x64xf32>
    %309 = vector.extract_strided_slice %306 {offsets = [0, 0], sizes = [8, 64], strides = [1, 1]} : vector<8x192xf32> to vector<8x64xf32>
    %310 = vector.extract_strided_slice %306 {offsets = [0, 64], sizes = [8, 64], strides = [1, 1]} : vector<8x192xf32> to vector<8x64xf32>
    %311 = vector.extract_strided_slice %306 {offsets = [0, 128], sizes = [8, 64], strides = [1, 1]} : vector<8x192xf32> to vector<8x64xf32>
    %312 = arith.mulf %310, %266 : vector<8x64xf32>
    %313 = arith.mulf %309, %308 : vector<8x64xf32>
    %314 = arith.addf %312, %313 : vector<8x64xf32>
    %315 = math.tanh %314 : vector<8x64xf32>
    %316 = arith.mulf %311, %315 : vector<8x64xf32>
    %c0_100 = arith.constant 0 : index
    %c0_101 = arith.constant 0 : index
    %317 = vector.load %arg3[%c0_100, %c0_101] : memref<64x256xf32, #tpu.memory_space<vmem>>, vector<64x256xf32>
    %cst_102 = arith.constant dense<0.000000e+00> : vector<8x256xf32>
    %318 = tpu.matmul %316, %317, %cst_102 {dimension_numbers = #tpu.dot_dimension_numbers<[1], [0], [0], [1], [0, 0, 1, 1], [], []>} : vector<8x64xf32>, vector<64x256xf32>, vector<8x256xf32> -> vector<8x256xf32>
    %319 = arith.addf %294, %318 : vector<8x256xf32>
    %320 = vector.extract_strided_slice %319 {offsets = [0, 0], sizes = [8, 192], strides = [1, 1]} : vector<8x256xf32> to vector<8x192xf32>
    %321 = arith.negf %320 : vector<8x192xf32>
    %322 = math.exp %321 : vector<8x192xf32>
    %cst_103 = arith.constant 1.000000e+00 : f32
    %323 = vector.broadcast %cst_103 : f32 to vector<8x192xf32>
    %324 = arith.addf %323, %322 : vector<8x192xf32>
    %325 = arith.divf %323, %324 : vector<8x192xf32>
    %326 = vector.extract_strided_slice %319 {offsets = [0, 192], sizes = [8, 64], strides = [1, 1]} : vector<8x256xf32> to vector<8x64xf32>
    %327 = math.tanh %326 : vector<8x64xf32>
    %328 = vector.extract_strided_slice %325 {offsets = [0, 0], sizes = [8, 64], strides = [1, 1]} : vector<8x192xf32> to vector<8x64xf32>
    %329 = vector.extract_strided_slice %325 {offsets = [0, 64], sizes = [8, 64], strides = [1, 1]} : vector<8x192xf32> to vector<8x64xf32>
    %330 = vector.extract_strided_slice %325 {offsets = [0, 128], sizes = [8, 64], strides = [1, 1]} : vector<8x192xf32> to vector<8x64xf32>
    %331 = arith.mulf %329, %285 : vector<8x64xf32>
    %332 = arith.mulf %328, %327 : vector<8x64xf32>
    %333 = arith.addf %331, %332 : vector<8x64xf32>
    %334 = math.tanh %333 : vector<8x64xf32>
    %335 = arith.mulf %330, %334 : vector<8x64xf32>
    %336 = arith.index_cast %c6_i32 : i32 to index
    %c0_104 = arith.constant 0 : index
    %c0_105 = arith.constant 0 : index
    %337 = vector.load %arg6[%336, %c0_104, %c0_105] : memref<8x8x64xf32, #tpu.memory_space<vmem>>, vector<1x8x64xf32>
    %338 = vector.shape_cast %337 : vector<1x8x64xf32> to vector<8x64xf32>
    %339 = vector.shape_cast %335 : vector<8x64xf32> to vector<1x8x64xf32>
    tpu.vector_store %arg6[%336, %c0_104, %c0_105], %339 {strides = array<i32>} : memref<8x8x64xf32, #tpu.memory_space<vmem>>, vector<1x8x64xf32>,
    %c7_i32 = arith.constant 7 : i32
    %c0_106 = arith.constant 0 : index
    %c0_107 = arith.constant 0 : index
    %340 = vector.load %arg4[%c0_106, %c0_107] : memref<64x256xf32, #tpu.memory_space<vmem>>, vector<64x256xf32>
    %cst_108 = arith.constant dense<0.000000e+00> : vector<8x256xf32>
    %341 = tpu.matmul %335, %340, %cst_108 {dimension_numbers = #tpu.dot_dimension_numbers<[1], [0], [0], [1], [0, 0, 1, 1], [], []>} : vector<8x64xf32>, vector<64x256xf32>, vector<8x256xf32> -> vector<8x256xf32>
    %342 = arith.addf %341, %2 : vector<8x256xf32>
    %343 = arith.index_cast %c7_i32 : i32 to index
    %c0_109 = arith.constant 0 : index
    %c0_110 = arith.constant 0 : index
    %344 = vector.load %arg1[%343, %c0_109, %c0_110] : memref<8x8x256xf32, #tpu.memory_space<vmem>>, vector<1x8x256xf32>
    %345 = vector.shape_cast %344 : vector<1x8x256xf32> to vector<8x256xf32>
    %c0_111 = arith.constant 0 : index
    %c0_112 = arith.constant 0 : index
    %346 = vector.load %arg2[%c0_111, %c0_112] : memref<64x256xf32, #tpu.memory_space<vmem>>, vector<64x256xf32>
    %cst_113 = arith.constant dense<0.000000e+00> : vector<8x256xf32>
    %347 = tpu.matmul %316, %346, %cst_113 {dimension_numbers = #tpu.dot_dimension_numbers<[1], [0], [0], [1], [0, 0, 1, 1], [], []>} : vector<8x64xf32>, vector<64x256xf32>, vector<8x256xf32> -> vector<8x256xf32>
    %348 = arith.addf %345, %347 : vector<8x256xf32>
    %349 = vector.extract_strided_slice %348 {offsets = [0, 0], sizes = [8, 192], strides = [1, 1]} : vector<8x256xf32> to vector<8x192xf32>
    %350 = arith.negf %349 : vector<8x192xf32>
    %351 = math.exp %350 : vector<8x192xf32>
    %cst_114 = arith.constant 1.000000e+00 : f32
    %352 = vector.broadcast %cst_114 : f32 to vector<8x192xf32>
    %353 = arith.addf %352, %351 : vector<8x192xf32>
    %354 = arith.divf %352, %353 : vector<8x192xf32>
    %355 = vector.extract_strided_slice %348 {offsets = [0, 192], sizes = [8, 64], strides = [1, 1]} : vector<8x256xf32> to vector<8x64xf32>
    %356 = math.tanh %355 : vector<8x64xf32>
    %357 = vector.extract_strided_slice %354 {offsets = [0, 0], sizes = [8, 64], strides = [1, 1]} : vector<8x192xf32> to vector<8x64xf32>
    %358 = vector.extract_strided_slice %354 {offsets = [0, 64], sizes = [8, 64], strides = [1, 1]} : vector<8x192xf32> to vector<8x64xf32>
    %359 = vector.extract_strided_slice %354 {offsets = [0, 128], sizes = [8, 64], strides = [1, 1]} : vector<8x192xf32> to vector<8x64xf32>
    %360 = arith.mulf %358, %314 : vector<8x64xf32>
    %361 = arith.mulf %357, %356 : vector<8x64xf32>
    %362 = arith.addf %360, %361 : vector<8x64xf32>
    %363 = math.tanh %362 : vector<8x64xf32>
    %364 = arith.mulf %359, %363 : vector<8x64xf32>
    %c0_115 = arith.constant 0 : index
    %c0_116 = arith.constant 0 : index
    %365 = vector.load %arg3[%c0_115, %c0_116] : memref<64x256xf32, #tpu.memory_space<vmem>>, vector<64x256xf32>
    %cst_117 = arith.constant dense<0.000000e+00> : vector<8x256xf32>
    %366 = tpu.matmul %364, %365, %cst_117 {dimension_numbers = #tpu.dot_dimension_numbers<[1], [0], [0], [1], [0, 0, 1, 1], [], []>} : vector<8x64xf32>, vector<64x256xf32>, vector<8x256xf32> -> vector<8x256xf32>
    %367 = arith.addf %342, %366 : vector<8x256xf32>
    %368 = vector.extract_strided_slice %367 {offsets = [0, 0], sizes = [8, 192], strides = [1, 1]} : vector<8x256xf32> to vector<8x192xf32>
    %369 = arith.negf %368 : vector<8x192xf32>
    %370 = math.exp %369 : vector<8x192xf32>
    %cst_118 = arith.constant 1.000000e+00 : f32
    %371 = vector.broadcast %cst_118 : f32 to vector<8x192xf32>
    %372 = arith.addf %371, %370 : vector<8x192xf32>
    %373 = arith.divf %371, %372 : vector<8x192xf32>
    %374 = vector.extract_strided_slice %367 {offsets = [0, 192], sizes = [8, 64], strides = [1, 1]} : vector<8x256xf32> to vector<8x64xf32>
    %375 = math.tanh %374 : vector<8x64xf32>
    %376 = vector.extract_strided_slice %373 {offsets = [0, 0], sizes = [8, 64], strides = [1, 1]} : vector<8x192xf32> to vector<8x64xf32>
    %377 = vector.extract_strided_slice %373 {offsets = [0, 64], sizes = [8, 64], strides = [1, 1]} : vector<8x192xf32> to vector<8x64xf32>
    %378 = vector.extract_strided_slice %373 {offsets = [0, 128], sizes = [8, 64], strides = [1, 1]} : vector<8x192xf32> to vector<8x64xf32>
    %379 = arith.mulf %377, %333 : vector<8x64xf32>
    %380 = arith.mulf %376, %375 : vector<8x64xf32>
    %381 = arith.addf %379, %380 : vector<8x64xf32>
    %382 = math.tanh %381 : vector<8x64xf32>
    %383 = arith.mulf %378, %382 : vector<8x64xf32>
    %384 = arith.index_cast %c7_i32 : i32 to index
    %c0_119 = arith.constant 0 : index
    %c0_120 = arith.constant 0 : index
    %385 = vector.load %arg6[%384, %c0_119, %c0_120] : memref<8x8x64xf32, #tpu.memory_space<vmem>>, vector<1x8x64xf32>
    %386 = vector.shape_cast %385 : vector<1x8x64xf32> to vector<8x64xf32>
    %387 = vector.shape_cast %383 : vector<8x64xf32> to vector<1x8x64xf32>
    tpu.vector_store %arg6[%384, %c0_119, %c0_120], %387 {strides = array<i32>} : memref<8x8x64xf32, #tpu.memory_space<vmem>>, vector<1x8x64xf32>,
    %c8_i32 = arith.constant 8 : i32
    return
  }
  func.func @transform_0(%arg0: i32) -> (i32, i32, i32) {
    %c0_i32 = arith.constant 0 : i32
    %c0_i32_0 = arith.constant 0 : i32
    %c0_i32_1 = arith.constant 0 : i32
    %c0_i32_2 = arith.constant 0 : i32
    return %c0_i32, %c0_i32_0, %c0_i32_1 : i32, i32, i32
  }
  func.func @transform_1(%arg0: i32) -> (i32, i32) {
    %c0_i32 = arith.constant 0 : i32
    %c0_i32_0 = arith.constant 0 : i32
    %c0_i32_1 = arith.constant 0 : i32
    return %c0_i32, %c0_i32_0 : i32, i32
  }
  func.func @transform_2(%arg0: i32) -> (i32, i32) {
    %c0_i32 = arith.constant 0 : i32
    %c0_i32_0 = arith.constant 0 : i32
    %c0_i32_1 = arith.constant 0 : i32
    return %c0_i32, %c0_i32_0 : i32, i32
  }
  func.func @transform_3(%arg0: i32) -> (i32, i32) {
    %c0_i32 = arith.constant 0 : i32
    %c0_i32_0 = arith.constant 0 : i32
    %c0_i32_1 = arith.constant 0 : i32
    return %c0_i32, %c0_i32_0 : i32, i32
  }
  func.func @transform_4(%arg0: i32) -> (i32, i32) {
    %c0_i32 = arith.constant 0 : i32
    %c0_i32_0 = arith.constant 0 : i32
    %c0_i32_1 = arith.constant 0 : i32
    return %c0_i32, %c0_i32_0 : i32, i32
  }
  func.func @transform_5(%arg0: i32) -> (i32, i32, i32) {
    %c0_i32 = arith.constant 0 : i32
    %c0_i32_0 = arith.constant 0 : i32
    %c0_i32_1 = arith.constant 0 : i32
    %c0_i32_2 = arith.constant 0 : i32
    return %c0_i32, %c0_i32_0, %c0_i32_1 : i32, i32, i32
  }
}

</mosaic_0001>

<bundles_post_ra>
// kernel: trajectory_predictor.1
= control target key start
LH: loop header
LB: loop body
LE: loop exit
PB: predicated region body
PF: predicated region fallthrough
CT: control target
= control target key end

     0   :  { %10 = vsyncpa [#allocation3], 0  ;;  %s4055_s0 = inlined_call_operand.vmem [shape: f32[8,8,256], index: 0, kind: input, shape index: {}]   ;;  %s4056_s1 = inlined_call_operand.vmem [shape: f32[64,256], index: 1, kind: input, shape index: {}]   ;;  %s4057_s2 = inlined_call_operand.hbm [shape: f32[64,256], index: 2, kind: input, shape index: {}]   ;;  %s4058_s3 = inlined_call_operand.hbm [shape: f32[64,256], index: 3, kind: input, shape index: {}]   ;;  %s4059_s4 = inlined_call_operand.vmem [shape: f32[1,256], index: 4, kind: input, shape index: {}]   ;;  %s4060_s5 = inlined_call_operand.vmem [shape: f32[8,8,64], index: 5, kind: output, shape index: {}]  }
   0x1   :  { %11 = vsyncpa [#allocation5], 0  ;;  %s3070_s18 = smov [#allocation2]  }
   0x2   :  { %s21_s19 = sshll.u32 %s3070_s18, 4  ;;  %s22_s19 = int_to_ptr.vmem [resolvable:$true] %s21_s19 }
   0x3   :  { %s3034_s20 = scalar_lea.vmem %s22_s19, 2048  ;;  %p3039_p1 = scmp.lt.s32.totalorder %s22_s19, %s22_s19 }
   0x4   :  { %p3035_p0 = scmp.ne.s32.totalorder %s22_s19, %s3034_s20  ;;  %p3040_p2 = scmp.lt.s32.totalorder %s3034_s20, %s3034_s20 }
   0x6   :  { %p3041_p3 = por %p3040_p2, %p3039_p1 }
   0x8   :  { %p3042_p4 = pnand %p3041_p3, %p3035_p0 }
   0xa   :  { %3045 = shalt.err (!%p3042_p4)
}
   0xb   :  { %s3071_s21 = smov 256   ;;  %s3072_s22 = smov 16  }
   0xc   :  { %27 = dma.hbm_to_vmem [thread:$0]  %s4057_s2, 2048, %s22_s19, [#allocation3], %s3071_s21, %s3071_s21, %s3072_s22  }
   0xd   :  { %s3073_s25 = smov [#allocation4]  }
   0xe   :  { %s33_s26 = sshll.u32 %s3073_s25, 4  ;;  %s34_s26 = int_to_ptr.vmem [resolvable:$true] %s33_s26 }
   0xf   :  { %s3054_s27 = scalar_lea.vmem %s34_s26, 2048  ;;  %p3059_p6 = scmp.lt.s32.totalorder %s34_s26, %s34_s26 }
  0x10   :  { %p3055_p5 = scmp.ne.s32.totalorder %s34_s26, %s3054_s27  ;;  %p3060_p7 = scmp.lt.s32.totalorder %s3054_s27, %s3054_s27 }
  0x12   :  { %p3061_p8 = por %p3060_p7, %p3059_p6 }
  0x14   :  { %p3062_p9 = pnand %p3061_p8, %p3055_p5 }
  0x16   :  { %3065 = shalt.err (!%p3062_p9)
}
  0x17   :  { %39 = dma.hbm_to_vmem [thread:$0]  %s4058_s3, 2048, %s34_s26, [#allocation5], %s3071_s21, %s3071_s21, %s3072_s22  }
  0x18   :  { %3066 = dma.done.wait [#allocation3], 2048  }
  0x19   :  { %3067 = vsyncadd [#allocation3], 4294965248 }
  0x1a   :  { %3068 = dma.done.wait [#allocation5], 2048  }
  0x1b   :  { %3069 = vsyncadd [#allocation5], 4294965248  ;;  %v4061_v0 = vmov 0.0   ;;  %v3117_v1 = vld [vmem:[%s4056_s1 + $0x78] sm:$0xff]  ;;  %v3122_v2 = vld [vmem:[%s4056_s1 + $0x70] sm:$0xff]  ;;  %s3075_s10 = smov 64  }
  0x1c   :  { %233 = vmatprep.mubr.f32.mxu1 %v4061_v0  ;;  %144 = vmatprep.mubr.f32.mxu0 %v4061_v0  ;;  %v3127_v3 = vld [vmem:[%s4056_s1 + $0x68] sm:$0xff]  ;;  %v3133_v4 = vld [vmem:[%s4056_s1 + $0x60] sm:$0xff]  ;;  %v3139_v5 = vld [vmem:[%s4056_s1 + $0x58] sm:$0xff]  ;;  %vm76_vm0 = vcmask 523264  }
  0x1d   :  { %185 = vmatprep.subr.mxu1 %v3117_v1  ;;  %v3145_v6 = vld [vmem:[%s4056_s1 + $0x50] sm:$0xff]  ;;  %v3151_v7 = vld [vmem:[%s4056_s1 + $0x48] sm:$0xff]  ;;  %v3157_v8 = vld [vmem:[%s4056_s1 + $0x40] sm:$0xff] }
  0x1e   :  { %186 = vmatpush1.msra.mxu1 %v3122_v2  ;;  %v3163_v9 = vld [vmem:[%s4056_s1 + $0x38] sm:$0xff]  ;;  %v3169_v10 = vld [vmem:[%s4056_s1 + $0x30] sm:$0xff]  ;;  %v3175_v11 = vld [vmem:[%s4056_s1 + $0x28] sm:$0xff] }
  0x1f   :  { %187 = vmatprep.subr.mxu1 %v3127_v3  ;;  %v3181_v12 = vld [vmem:[%s4056_s1 + $0x20] sm:$0xff]  ;;  %v3187_v13 = vld [vmem:[%s4056_s1 + $0x18] sm:$0xff]  ;;  %v3193_v14 = vld [vmem:[%s4056_s1 + $0x10] sm:$0xff] }
  0x20   :  { %188 = vmatpush1.msra.mxu1 %v3133_v4  ;;  %v3199_v15 = vld [vmem:[%s4056_s1 + $0x8] sm:$0xff]  ;;  %v3205_v16 = vld [vmem:[%s4056_s1] sm:$0xff]  ;;  %v3226_v30 = vld [vmem:[#allocation4 + $0x78] sm:$0xff] }
  0x21   :  { %189 = vmatprep.subr.mxu1 %v3139_v5  ;;  %v152_v18 = vld [vmem:[%s4055_s0 + $0x8] sm:$0xff]  ;;  %v151_v22 = vld [vmem:[%s4055_s0] sm:$0xff]  ;;  %v3228_v31 = vld [vmem:[#allocation4 + $0x70] sm:$0xff]  ;;  %96 = vmatprep.subr.mxu0 %v3226_v30 }
  0x22   :  { %190 = vmatpush1.msra.mxu1 %v3145_v6  ;;  %v3230_v32 = vld [vmem:[#allocation4 + $0x68] sm:$0xff]  ;;  %v3233_v33 = vld [vmem:[#allocation4 + $0x60] sm:$0xff]  ;;  %97 = vmatpush1.msra.mxu0 %v3228_v31  ;;  %v3237_v34 = vld [vmem:[#allocation4 + $0x58] sm:$0xff] }
  0x23   :  { %191 = vmatprep.subr.mxu1 %v3151_v7  ;;  %98 = vmatprep.subr.mxu0 %v3230_v32  ;;  %v3241_v35 = vld [vmem:[#allocation4 + $0x50] sm:$0xff]  ;;  %v3245_v36 = vld [vmem:[#allocation4 + $0x48] sm:$0xff]  ;;  %v3249_v37 = vld [vmem:[#allocation4 + $0x40] sm:$0xff] }
  0x24   :  { %192 = vmatpush1.msra.mxu1 %v3157_v8  ;;  %99 = vmatpush1.msra.mxu0 %v3233_v33  ;;  %v3253_v38 = vld [vmem:[#allocation4 + $0x38] sm:$0xff]  ;;  %v3257_v39 = vld [vmem:[#allocation4 + $0x30] sm:$0xff]  ;;  %v3261_v40 = vld [vmem:[#allocation4 + $0x28] sm:$0xff] }
  0x25   :  { %193 = vmatprep.subr.mxu1 %v3163_v9  ;;  %100 = vmatprep.subr.mxu0 %v3237_v34  ;;  %v3265_v41 = vld [vmem:[#allocation4 + $0x20] sm:$0xff]  ;;  %v3269_v42 = vld [vmem:[#allocation4 + $0x18] sm:$0xff]  ;;  %v3273_v43 = vld [vmem:[#allocation4 + $0x10] sm:$0xff] }
  0x26   :  { %194 = vmatpush1.msra.mxu1 %v3169_v10  ;;  %101 = vmatpush1.msra.mxu0 %v3241_v35  ;;  %v3277_v44 = vld [vmem:[#allocation4 + $0x8] sm:$0xff]  ;;  %v3281_v45 = vld [vmem:[#allocation4] sm:$0xff]  ;;  %v3285_v46 = vld [vmem:[#allocation2 + $0x78] sm:$0xff] }
  0x27   :  { %195 = vmatprep.subr.mxu1 %v3175_v11  ;;  %102 = vmatprep.subr.mxu0 %v3245_v36  ;;  %4074 = vst [vmem:[#allocation8_spill] sm:$0xff] %v3281_v45  ;;  %4075 = vst [vmem:[#allocation9_spill] sm:$0xff] %v3285_v46  ;;  %v3289_v47 = vld [vmem:[#allocation2 + $0x70] sm:$0xff]  ;;  %v3293_v48 = vld [vmem:[#allocation2 + $0x68] sm:$0xff] }
  0x28   :  { %196 = vmatpush1.msra.mxu1 %v3181_v12  ;;  %103 = vmatpush1.msra.mxu0 %v3249_v37  ;;  %v3298_v49 = vld [vmem:[#allocation2 + $0x60] sm:$0xff]  ;;  %v3301_v50 = vld [vmem:[#allocation2 + $0x58] sm:$0xff]  ;;  %v3305_v51 = vld [vmem:[#allocation2 + $0x50] sm:$0xff] }
  0x29   :  { %197 = vmatprep.subr.mxu1 %v3187_v13  ;;  %104 = vmatprep.subr.mxu0 %v3253_v38  ;;  %v3309_v52 = vld [vmem:[#allocation2 + $0x48] sm:$0xff]  ;;  %v3312_v53 = vld [vmem:[#allocation2 + $0x40] sm:$0xff]  ;;  %v3315_v54 = vld [vmem:[#allocation2 + $0x38] sm:$0xff] }
  0x2a   :  { %198 = vmatpush1.msra.mxu1 %v3193_v14  ;;  %105 = vmatpush1.msra.mxu0 %v3257_v39  ;;  %v3318_v55 = vld [vmem:[#allocation2 + $0x30] sm:$0xff]  ;;  %v3321_v56 = vld [vmem:[#allocation2 + $0x28] sm:$0xff]  ;;  %v3324_v57 = vld [vmem:[#allocation2 + $0x20] sm:$0xff] }
  0x2b   :  { %199 = vmatprep.subr.mxu1 %v3199_v15  ;;  %106 = vmatprep.subr.mxu0 %v3261_v40  ;;  %v3327_v58 = vld [vmem:[#allocation2 + $0x18] sm:$0xff]  ;;  %v3330_v59 = vld [vmem:[#allocation2 + $0x10] sm:$0xff]  ;;  %v3338_v63 = vld [vmem:[#allocation2 + $0x8] sm:$0xff] }
  0x2c   :  { %200 = vmatpush1.msra.mxu1 %v3205_v16  ;;  %107 = vmatpush1.msra.mxu0 %v3265_v41 }
  0x2d   :  { %234 = vmatmul.mubr.f32.vlgmr.msra.gmra.mxu1 %v4061_v0  ;;  %430 = vmatprep.subr.mxu1 %v3226_v30 }
  0x2e   :  { %478 = vmatprep.mubr.f32.mxu1 %v4061_v0  ;;  %431 = vmatpush1.msra.mxu1 %v3228_v31 }
  0x2f   :  { %432 = vmatprep.subr.mxu1 %v3230_v32  ;;  %108 = vmatprep.subr.mxu0 %v3269_v42 }
  0x30   :  { %433 = vmatpush1.msra.mxu1 %v3233_v33  ;;  %109 = vmatpush1.msra.mxu0 %v3273_v43 }
  0x31   :  { %434 = vmatprep.subr.mxu1 %v3237_v34  ;;  %110 = vmatprep.subr.mxu0 %v3277_v44 }
  0x32   :  { %435 = vmatpush1.msra.mxu1 %v3241_v35  ;;  %111 = vmatpush1.msra.mxu0 %v3281_v45 }
  0x33   :  { %436 = vmatprep.subr.mxu1 %v3245_v36  ;;  %145 = vmatmul.mubr.f32.vlgmr.msra.gmra.mxu0 %v4061_v0 }
  0x34   :  { %437 = vmatpush1.msra.mxu1 %v3249_v37  ;;  %307 = vmatprep.subr.mxu0 %v3285_v46 }
  0x35   :  { %438 = vmatprep.subr.mxu1 %v3253_v38  ;;  %308 = vmatpush1.msra.mxu0 %v3289_v47 }
  0x36   :  { %439 = vmatpush1.msra.mxu1 %v3257_v39  ;;  %355 = vmatprep.mubr.f32.mxu0 %v4061_v0 }
  0x37   :  { %440 = vmatprep.subr.mxu1 %v3261_v40  ;;  %309 = vmatprep.subr.mxu0 %v3293_v48 }
  0x38   :  { %441 = vmatpush1.msra.mxu1 %v3265_v41  ;;  %310 = vmatpush1.msra.mxu0 %v3298_v49 }
  0x39   :  { %442 = vmatprep.subr.mxu1 %v3269_v42  ;;  %311 = vmatprep.subr.mxu0 %v3301_v50 }
  0x3a   :  { %443 = vmatpush1.msra.mxu1 %v3273_v43  ;;  %312 = vmatpush1.msra.mxu0 %v3305_v51 }
  0x3b   :  { %444 = vmatprep.subr.mxu1 %v3277_v44  ;;  %313 = vmatprep.subr.mxu0 %v3309_v52 }
  0x3c   :  { %445 = vmatpush1.msra.mxu1 %v3281_v45  ;;  %314 = vmatpush1.msra.mxu0 %v3312_v53 }
  0x3d   :  { %642 = vmatprep.subr.mxu1 %v3285_v46  ;;  %315 = vmatprep.subr.mxu0 %v3315_v54 }
  0x3e   :  { %316 = vmatpush1.msra.mxu0 %v3318_v55 }
  0x3f   :  { %317 = vmatprep.subr.mxu0 %v3321_v56 }
  0x40   :  { %318 = vmatpush1.msra.mxu0 %v3324_v57 }
  0x41   :  { %319 = vmatprep.subr.mxu0 %v3327_v58 }
  0x42   :  { %320 = vmatpush1.msra.mxu0 %v3330_v59 }
  0x43   :  { %321 = vmatprep.subr.mxu0 %v3338_v63 }
  0xed   :  { %v235_v17 = vpop.f32.mrf.mxu1 }
  0xee   :  { %v240_v23 = vadd.f32 %v235_v17, %v151_v22  ;;  %v3342_v17 = vld [vmem:[#allocation2] sm:$0xff] }
  0xef   :  { %v237_v19 = vpop.f32.mrf.mxu1  ;;  %322 = vmatpush1.msra.mxu0 %v3342_v17  ;;  %v48_v22 = vld [vmem:[%s4059_s4] sm:$0x3] }
  0xf0   :  { %v3215_v20 = vadd.f32 %v237_v19, %v152_v18  ;;  %v2753_v24 = vmul.f32 -1.442695, %v240_v23  ;;  %520 = vmatprep.subr.mxu0 %v3117_v1  ;;  %v50_v19 = vlaneseq }
  0xf2   :  { %2834 = vtanh.f32 %v3215_v20 }
  0xf3   :  { %2836 = vpow2.f32 %v2753_v24 }
  0xff   :  { %v2835_v21 = vpop.eup %2834 }
 0x100   :  { %257 = vrot.lane.b32.xlu0 %v2835_v21, %s3075_s10  ;;  %v2837_v25 = vpop.eup %2836  ;;  %v51_v21 = vshrl.u32 %v50_v19, 7 }
 0x101   :  { %v248_v26 = vadd.f32 1.0, %v2837_v25  ;;  %v2754_v25 = vmul.f32 -1.442695, %v3215_v20 }
 0x102   :  { %v52_v23 = vsub.s32 0, %v51_v21  ;;  %v56_v20 = vsub.s32 1, %v51_v21 }
 0x103   :  { %2838 = vrcp.f32 %v248_v26 }
 0x104   :  { %v3350_v24 = vrot.slane %v48_v22, %v52_v23 }
 0x106   :  { %4076 = vst [vmem:[#allocation10_spill] sm:$0xff] %v3350_v24 }
 0x110   :  { %v3222_v27 = vpop.eup %2838 }
 0x111   :  { %v255_v60 = vmul.f32 0.0, %v3222_v27 }
 0x172   :  { %v258_v28 = vpop.permute.xlu0 %257 }
 0x173   :  { %v260_v29 = vmul.f32 %v3222_v27, %v258_v28 }
 0x175   :  { %262 = vrot.lane.b32.xlu0 %v260_v29, %s3075_s10 }
 0x1e7   :  { %v263_v61 = vpop.permute.xlu0 %262 }
 0x1e8   :  { %v3336_v62 = vadd.f32 %v263_v61, %v255_v60  ;;  %v146_v61 = vpop.f32.mrf.mxu0 }
 0x1e9   :  { %v147_v23 = vadd.f32 %v146_v61, %v3350_v24 }
 0x1ea   :  { %2840 = vtanh.f32 %v3336_v62  ;;  %v148_v19 = vpop.f32.mrf.mxu0 }
 0x1eb   :  { %2842 = vpow2.f32 %v2754_v25 }
 0x1f7   :  { %v2841_v18 = vpop.eup %2840 }
 0x1f8   :  { %268 = vrot.lane.b32.xlu1 %v2841_v18, %s3075_s10  ;;  %v2843_v26 = vpop.eup %2842  ;;  %v3389_v18 = vrot.slane %v48_v22, %v56_v20 }
 0x1f9   :  { %v249_v27 = vadd.f32 1.0, %v2843_v26 }
 0x1fa   :  { %4077 = vst [vmem:[#allocation11_spill] sm:$0xff] %v3389_v18  ;;  %v149_v26 = vadd.f32 %v148_v19, %v3389_v18  ;;  %v2759_v19 = vld [vmem:[%s4055_s0 + $0x10] sm:$0xff] }
 0x1fb   :  { %2844 = vrcp.f32 %v249_v27 }
 0x208   :  { %v2845_v28 = vpop.eup %2844 }
 0x26a   :  { %v269_v29 = vpop.permute.xlu1 %268 }
 0x26b   :  { %v271_v60 = vmul.f32 %v2845_v28, %v269_v29 }
 0x26d   :  { %2755 = vmatmul.mubr.msk.f32.vlgmr.msra.gmra.mxu0 %vm76_vm0, %v271_v60 }
 0x26e   :  { %521 = vmatpush1.msra.mxu0 %v3122_v2  ;;  %568 = vmatprep.mubr.f32.mxu0 %v4061_v0 }
 0x26f   :  { %522 = vmatprep.subr.mxu0 %v3127_v3 }
 0x270   :  { %523 = vmatpush1.msra.mxu0 %v3133_v4 }
 0x271   :  { %524 = vmatprep.subr.mxu0 %v3139_v5 }
 0x272   :  { %525 = vmatpush1.msra.mxu0 %v3145_v6 }
 0x273   :  { %526 = vmatprep.subr.mxu0 %v3151_v7 }
 0x274   :  { %527 = vmatpush1.msra.mxu0 %v3157_v8 }
 0x275   :  { %528 = vmatprep.subr.mxu0 %v3163_v9 }
 0x276   :  { %529 = vmatpush1.msra.mxu0 %v3169_v10 }
 0x277   :  { %530 = vmatprep.subr.mxu0 %v3175_v11 }
 0x278   :  { %531 = vmatpush1.msra.mxu0 %v3181_v12 }
 0x279   :  { %532 = vmatprep.subr.mxu0 %v3187_v13 }
 0x27a   :  { %533 = vmatpush1.msra.mxu0 %v3193_v14 }
 0x27b   :  { %534 = vmatprep.subr.mxu0 %v3199_v15 }
 0x27c   :  { %535 = vmatpush1.msra.mxu0 %v3205_v16 }
 0x27d   :  { %2761 = vmatmul.mubr.msk.f32.vlgmr.msra.gmra.mxu0 %vm76_vm0, %v271_v60  ;;  %766 = vmatprep.subr.mxu0 %v3226_v30 }
 0x27e   :  { %767 = vmatpush1.msra.mxu0 %v3228_v31  ;;  %814 = vmatprep.mubr.f32.mxu0 %v4061_v0  ;;  %v2760_v0 = vld [vmem:[%s4055_s0 + $0x18] sm:$0xff] }
 0x27f   :  { %768 = vmatprep.subr.mxu0 %v3230_v32 }
 0x280   :  { %769 = vmatpush1.msra.mxu0 %v3233_v33 }
 0x281   :  { %770 = vmatprep.subr.mxu0 %v3237_v34 }
 0x282   :  { %771 = vmatpush1.msra.mxu0 %v3241_v35 }
 0x283   :  { %772 = vmatprep.subr.mxu0 %v3245_v36 }
 0x284   :  { %773 = vmatpush1.msra.mxu0 %v3249_v37 }
 0x285   :  { %774 = vmatprep.subr.mxu0 %v3253_v38 }
 0x286   :  { %775 = vmatpush1.msra.mxu0 %v3257_v39 }
 0x287   :  { %776 = vmatprep.subr.mxu0 %v3261_v40 }
 0x288   :  { %777 = vmatpush1.msra.mxu0 %v3265_v41 }
 0x289   :  { %778 = vmatprep.subr.mxu0 %v3269_v42 }
 0x28a   :  { %779 = vmatpush1.msra.mxu0 %v3273_v43 }
 0x28b   :  { %780 = vmatprep.subr.mxu0 %v3277_v44 }
 0x28c   :  { %781 = vmatpush1.msra.mxu0 %v3281_v45 }
 0x28d   :  { %978 = vmatprep.subr.mxu0 %v3285_v46 }
 0x32d   :  { %v357_v25 = vpop.f32.mrf.mxu0 }
 0x32e   :  { %v362_v27 = vadd.f32 %v357_v25, %v147_v23 }
 0x32f   :  { %v359_v28 = vpop.f32.mrf.mxu0 }
 0x330   :  { %v363_v29 = vadd.f32 %v359_v28, %v149_v26  ;;  %v2756_v61 = vmul.f32 -1.442695, %v362_v27 }
 0x332   :  { %2846 = vtanh.f32 %v363_v29 }
 0x33d   :  { %v570_v60 = vpop.f32.mrf.mxu0 }
 0x33e   :  { %v575_v23 = vadd.f32 %v2759_v19, %v570_v60 }
 0x33f   :  { %v572_v46 = vpop.f32.mrf.mxu0  ;;  %v2847_v21 = vpop.eup %2846 }
 0x340   :  { %379 = vrot.lane.b32.xlu1 %v2847_v21, %s3075_s10  ;;  %v576_v22 = vadd.f32 %v2760_v0, %v572_v46  ;;  %v2762_v26 = vmul.f32 -1.442695, %v575_v23 }
 0x342   :  { %2848 = vtanh.f32 %v576_v22 }
 0x343   :  { %2850 = vpow2.f32 %v2756_v61 }
 0x344   :  { %2852 = vpow2.f32 %v2762_v26 }
 0x34f   :  { %v2849_v20 = vpop.eup %2848 }
 0x350   :  { %592 = vrot.lane.b32.xlu0 %v2849_v20, %s3075_s10  ;;  %v2851_v25 = vpop.eup %2850 }
 0x351   :  { %v370_v28 = vadd.f32 1.0, %v2851_v25  ;;  %v2853_v18 = vpop.eup %2852 }
 0x352   :  { %v583_v46 = vadd.f32 1.0, %v2853_v18 }
 0x353   :  { %2854 = vrcp.f32 %v370_v28 }
 0x354   :  { %2856 = vrcp.f32 %v583_v46 }
 0x360   :  { %v2855_v24 = vpop.eup %2854 }
 0x361   :  { %v2857_v27 = vpop.eup %2856  ;;  %v377_v45 = vmul.f32 0.0, %v2855_v24 }
 0x362   :  { %v590_v25 = vmul.f32 %v2857_v27, %v3336_v62 }
 0x3b2   :  { %v380_v21 = vpop.permute.xlu1 %379 }
 0x3b3   :  { %v382_v0 = vmul.f32 %v2855_v24, %v380_v21  ;;  %v2757_v21 = vmul.f32 -1.442695, %v363_v29  ;;  %v4078_v29 = vmov 0.0  }
 0x3b5   :  { %384 = vrot.lane.b32.xlu1 %v382_v0, %s3075_s10 }
 0x3c2   :  { %v593_v20 = vpop.permute.xlu0 %592 }
 0x3c3   :  { %v595_v61 = vmul.f32 %v2857_v27, %v593_v20 }
 0x3c5   :  { %597 = vrot.lane.b32.xlu0 %v595_v61, %s3075_s10 }
 0x427   :  { %v385_v60 = vpop.permute.xlu1 %384 }
 0x428   :  { %v3403_v19 = vadd.f32 %v385_v60, %v377_v45  ;;  %v2763_v45 = vmul.f32 -1.442695, %v576_v22 }
 0x42a   :  { %2858 = vtanh.f32 %v3403_v19 }
 0x437   :  { %v2859_v23 = vpop.eup %2858  ;;  %v598_v18 = vpop.permute.xlu0 %597 }
 0x438   :  { %390 = vrot.lane.b32.xlu1 %v2859_v23, %s3075_s10  ;;  %v3408_v26 = vadd.f32 %v598_v18, %v590_v25 }
 0x43a   :  { %2860 = vtanh.f32 %v3408_v26 }
 0x43b   :  { %2862 = vpow2.f32 %v2757_v21 }
 0x43c   :  { %2864 = vpow2.f32 %v2763_v45 }
 0x447   :  { %v2861_v28 = vpop.eup %2860 }
 0x448   :  { %603 = vrot.lane.b32.xlu0 %v2861_v28, %s3075_s10  ;;  %v2863_v24 = vpop.eup %2862 }
 0x449   :  { %v371_v0 = vadd.f32 1.0, %v2863_v24  ;;  %v2865_v46 = vpop.eup %2864  ;;  %v2769_v24 = vld [vmem:[%s4055_s0 + $0x20] sm:$0xff] }
 0x44a   :  { %v584_v62 = vadd.f32 1.0, %v2865_v46 }
 0x44b   :  { %2866 = vrcp.f32 %v371_v0 }
 0x44c   :  { %2868 = vrcp.f32 %v584_v62 }
 0x458   :  { %v2867_v20 = vpop.eup %2866 }
 0x459   :  { %v2869_v22 = vpop.eup %2868 }
 0x4aa   :  { %v391_v61 = vpop.permute.xlu1 %390 }
 0x4ab   :  { %v393_v60 = vmul.f32 %v2867_v20, %v391_v61 }
 0x4ad   :  { %394 = vst.msk [vmem:[%s4060_s5] sm:$0xff] %vm76_vm0, %v393_v60  ;;  %2758 = vmatmul.mubr.msk.f32.vlgmr.msra.gmra.mxu1 %vm76_vm0, %v393_v60 }
 0x4ae   :  { %643 = vmatpush1.msra.mxu1 %v3289_v47  ;;  %690 = vmatprep.mubr.f32.mxu1 %v4078_v29 }
 0x4af   :  { %644 = vmatprep.subr.mxu1 %v3293_v48 }
 0x4b0   :  { %645 = vmatpush1.msra.mxu1 %v3298_v49 }
 0x4b1   :  { %646 = vmatprep.subr.mxu1 %v3301_v50 }
 0x4b2   :  { %647 = vmatpush1.msra.mxu1 %v3305_v51 }
 0x4b3   :  { %648 = vmatprep.subr.mxu1 %v3309_v52 }
 0x4b4   :  { %649 = vmatpush1.msra.mxu1 %v3312_v53 }
 0x4b5   :  { %650 = vmatprep.subr.mxu1 %v3315_v54 }
 0x4b6   :  { %651 = vmatpush1.msra.mxu1 %v3318_v55 }
 0x4b7   :  { %652 = vmatprep.subr.mxu1 %v3321_v56 }
 0x4b8   :  { %653 = vmatpush1.msra.mxu1 %v3324_v57 }
 0x4b9   :  { %654 = vmatprep.subr.mxu1 %v3327_v58 }
 0x4ba   :  { %655 = vmatpush1.msra.mxu1 %v3330_v59  ;;  %v604_v27 = vpop.permute.xlu0 %603 }
 0x4bb   :  { %656 = vmatprep.subr.mxu1 %v3338_v63  ;;  %v606_v23 = vmul.f32 %v2869_v22, %v604_v27 }
 0x4bc   :  { %657 = vmatpush1.msra.mxu1 %v3342_v17 }
 0x4bd   :  { %856 = vmatprep.subr.mxu1 %v3117_v1  ;;  %2764 = vmatmul.mubr.msk.f32.vlgmr.msra.gmra.mxu1 %vm76_vm0, %v606_v23 }
 0x4be   :  { %857 = vmatpush1.msra.mxu1 %v3122_v2  ;;  %904 = vmatprep.mubr.f32.mxu1 %v4078_v29 }
 0x4bf   :  { %858 = vmatprep.subr.mxu1 %v3127_v3 }
 0x4c0   :  { %859 = vmatpush1.msra.mxu1 %v3133_v4 }
 0x4c1   :  { %860 = vmatprep.subr.mxu1 %v3139_v5 }
 0x4c2   :  { %861 = vmatpush1.msra.mxu1 %v3145_v6 }
 0x4c3   :  { %862 = vmatprep.subr.mxu1 %v3151_v7 }
 0x4c4   :  { %863 = vmatpush1.msra.mxu1 %v3157_v8 }
 0x4c5   :  { %864 = vmatprep.subr.mxu1 %v3163_v9 }
 0x4c6   :  { %865 = vmatpush1.msra.mxu1 %v3169_v10 }
 0x4c7   :  { %866 = vmatprep.subr.mxu1 %v3175_v11 }
 0x4c8   :  { %867 = vmatpush1.msra.mxu1 %v3181_v12 }
 0x4c9   :  { %868 = vmatprep.subr.mxu1 %v3187_v13 }
 0x4ca   :  { %869 = vmatpush1.msra.mxu1 %v3193_v14 }
 0x4cb   :  { %870 = vmatprep.subr.mxu1 %v3199_v15 }
 0x4cc   :  { %871 = vmatpush1.msra.mxu1 %v3205_v16 }
 0x4cd   :  { %2771 = vmatmul.mubr.msk.f32.vlgmr.msra.gmra.mxu1 %vm76_vm0, %v606_v23  ;;  %1102 = vmatprep.subr.mxu1 %v3226_v30  ;;  %v4079_v30 = vld [vmem:[#allocation8_spill] sm:$0xff] }
 0x4ce   :  { %1103 = vmatpush1.msra.mxu1 %v3228_v31  ;;  %1150 = vmatprep.mubr.f32.mxu1 %v4078_v29  ;;  %v4080_v31 = vld [vmem:[#allocation9_spill] sm:$0xff] }
 0x4cf   :  { %1104 = vmatprep.subr.mxu1 %v3230_v32 }
 0x4d0   :  { %1105 = vmatpush1.msra.mxu1 %v3233_v33 }
 0x4d1   :  { %1106 = vmatprep.subr.mxu1 %v3237_v34  ;;  %v4081_v34 = vld [vmem:[#allocation10_spill] sm:$0xff] }
 0x4d2   :  { %1107 = vmatpush1.msra.mxu1 %v3241_v35 }
 0x4d3   :  { %1108 = vmatprep.subr.mxu1 %v3245_v36 }
 0x4d4   :  { %1109 = vmatpush1.msra.mxu1 %v3249_v37  ;;  %v4082_v37 = vld [vmem:[#allocation11_spill] sm:$0xff] }
 0x4d5   :  { %1110 = vmatprep.subr.mxu1 %v3253_v38 }
 0x4d6   :  { %1111 = vmatpush1.msra.mxu1 %v3257_v39 }
 0x4d7   :  { %1112 = vmatprep.subr.mxu1 %v3261_v40 }
 0x4d8   :  { %1113 = vmatpush1.msra.mxu1 %v3265_v41 }
 0x4d9   :  { %1114 = vmatprep.subr.mxu1 %v3269_v42 }
 0x4da   :  { %1115 = vmatpush1.msra.mxu1 %v3273_v43  ;;  %v2770_v43 = vld [vmem:[%s4055_s0 + $0x28] sm:$0xff] }
 0x4db   :  { %1116 = vmatprep.subr.mxu1 %v3277_v44 }
 0x4dc   :  { %1117 = vmatpush1.msra.mxu1 %v4079_v30 }
 0x4dd   :  { %1314 = vmatprep.subr.mxu1 %v4080_v31 }
 0x56d   :  { %v480_v32 = vpop.f32.mrf.mxu1 }
 0x56e   :  { %v481_v35 = vadd.f32 %v480_v32, %v4081_v34 }
 0x56f   :  { %v482_v33 = vpop.f32.mrf.mxu1 }
 0x570   :  { %v483_v38 = vadd.f32 %v482_v33, %v4082_v37 }
 0x57d   :  { %v692_v36 = vpop.f32.mrf.mxu1 }
 0x57e   :  { %v697_v39 = vadd.f32 %v692_v36, %v481_v35 }
 0x57f   :  { %v694_v40 = vpop.f32.mrf.mxu1 }
 0x580   :  { %v698_v41 = vadd.f32 %v694_v40, %v483_v38  ;;  %v2765_v21 = vmul.f32 -1.442695, %v697_v39 }
 0x582   :  { %2870 = vtanh.f32 %v698_v41 }
 0x58d   :  { %v906_v42 = vpop.f32.mrf.mxu1 }
 0x58e   :  { %v911_v45 = vadd.f32 %v2769_v24, %v906_v42 }
 0x58f   :  { %v908_v44 = vpop.f32.mrf.mxu1  ;;  %v2871_v25 = vpop.eup %2870 }
 0x590   :  { %714 = vrot.lane.b32.xlu1 %v2871_v25, %s3075_s10  ;;  %v912_v18 = vadd.f32 %v2770_v43, %v908_v44  ;;  %v2772_v46 = vmul.f32 -1.442695, %v911_v45  ;;  %v2766_v43 = vmul.f32 -1.442695, %v698_v41 }
 0x592   :  { %2872 = vtanh.f32 %v912_v18  ;;  %v2773_v44 = vmul.f32 -1.442695, %v912_v18 }
 0x593   :  { %2874 = vpow2.f32 %v2765_v21 }
 0x594   :  { %2876 = vpow2.f32 %v2772_v46 }
 0x59f   :  { %v2873_v28 = vpop.eup %2872 }
 0x5a0   :  { %928 = vrot.lane.b32.xlu0 %v2873_v28, %s3075_s10  ;;  %v2875_v0 = vpop.eup %2874 }
 0x5a1   :  { %v705_v20 = vadd.f32 1.0, %v2875_v0  ;;  %v2877_v61 = vpop.eup %2876 }
 0x5a2   :  { %v919_v27 = vadd.f32 1.0, %v2877_v61 }
 0x5a3   :  { %2878 = vrcp.f32 %v705_v20 }
 0x5a4   :  { %2880 = vrcp.f32 %v919_v27 }
 0x5b0   :  { %v2879_v60 = vpop.eup %2878 }
 0x5b1   :  { %v2881_v23 = vpop.eup %2880  ;;  %v712_v32 = vmul.f32 %v2879_v60, %v3403_v19 }
 0x5b2   :  { %v926_v38 = vmul.f32 %v2881_v23, %v3408_v26 }
 0x602   :  { %v715_v62 = vpop.permute.xlu1 %714 }
 0x603   :  { %v717_v22 = vmul.f32 %v2879_v60, %v715_v62 }
 0x605   :  { %719 = vrot.lane.b32.xlu1 %v717_v22, %s3075_s10 }
 0x612   :  { %v929_v30 = vpop.permute.xlu0 %928 }
 0x613   :  { %v931_v31 = vmul.f32 %v2881_v23, %v929_v30 }
 0x615   :  { %933 = vrot.lane.b32.xlu0 %v931_v31, %s3075_s10 }
 0x677   :  { %v720_v33 = vpop.permute.xlu1 %719 }
 0x678   :  { %v3483_v35 = vadd.f32 %v720_v33, %v712_v32 }
 0x67a   :  { %2882 = vtanh.f32 %v3483_v35 }
 0x687   :  { %v2883_v36 = vpop.eup %2882  ;;  %v934_v39 = vpop.permute.xlu0 %933 }
 0x688   :  { %725 = vrot.lane.b32.xlu1 %v2883_v36, %s3075_s10  ;;  %v3488_v40 = vadd.f32 %v934_v39, %v926_v38 }
 0x68a   :  { %2884 = vtanh.f32 %v3488_v40 }
 0x68b   :  { %2886 = vpow2.f32 %v2766_v43 }
 0x68c   :  { %2888 = vpow2.f32 %v2773_v44 }
 0x697   :  { %v2885_v42 = vpop.eup %2884 }
 0x698   :  { %939 = vrot.lane.b32.xlu0 %v2885_v42, %s3075_s10  ;;  %v2887_v19 = vpop.eup %2886 }
 0x699   :  { %v706_v25 = vadd.f32 1.0, %v2887_v19  ;;  %v2889_v28 = vpop.eup %2888 }
 0x69a   :  { %v920_v26 = vadd.f32 1.0, %v2889_v28 }
 0x69b   :  { %2890 = vrcp.f32 %v706_v25 }
 0x69c   :  { %2892 = vrcp.f32 %v920_v26 }
 0x6a8   :  { %v2891_v21 = vpop.eup %2890 }
 0x6a9   :  { %v2893_v41 = vpop.eup %2892 }
 0x6fa   :  { %v726_v24 = vpop.permute.xlu1 %725 }
 0x6fb   :  { %v728_v45 = vmul.f32 %v2891_v21, %v726_v24 }
 0x6fd   :  { %2767 = vst.msk [vmem:[%s4060_s5 + $0x8] sm:$0xff] %vm76_vm0, %v728_v45  ;;  %2768 = vmatmul.mubr.msk.f32.vlgmr.msra.gmra.mxu0 %vm76_vm0, %v728_v45 }
 0x6fe   :  { %979 = vmatpush1.msra.mxu0 %v3289_v47  ;;  %1026 = vmatprep.mubr.f32.mxu0 %v4078_v29 }
 0x6ff   :  { %980 = vmatprep.subr.mxu0 %v3293_v48 }
 0x700   :  { %981 = vmatpush1.msra.mxu0 %v3298_v49 }
 0x701   :  { %982 = vmatprep.subr.mxu0 %v3301_v50 }
 0x702   :  { %983 = vmatpush1.msra.mxu0 %v3305_v51 }
 0x703   :  { %984 = vmatprep.subr.mxu0 %v3309_v52 }
 0x704   :  { %985 = vmatpush1.msra.mxu0 %v3312_v53 }
 0x705   :  { %986 = vmatprep.subr.mxu0 %v3315_v54 }
 0x706   :  { %987 = vmatpush1.msra.mxu0 %v3318_v55 }
 0x707   :  { %988 = vmatprep.subr.mxu0 %v3321_v56 }
 0x708   :  { %989 = vmatpush1.msra.mxu0 %v3324_v57 }
 0x709   :  { %990 = vmatprep.subr.mxu0 %v3327_v58 }
 0x70a   :  { %991 = vmatpush1.msra.mxu0 %v3330_v59  ;;  %v940_v18 = vpop.permute.xlu0 %939 }
 0x70b   :  { %992 = vmatprep.subr.mxu0 %v3338_v63  ;;  %v942_v0 = vmul.f32 %v2893_v41, %v940_v18 }
 0x70c   :  { %993 = vmatpush1.msra.mxu0 %v3342_v17 }
 0x70d   :  { %1192 = vmatprep.subr.mxu0 %v3117_v1  ;;  %2774 = vmatmul.mubr.msk.f32.vlgmr.msra.gmra.mxu0 %vm76_vm0, %v942_v0 }
 0x70e   :  { %1193 = vmatpush1.msra.mxu0 %v3122_v2  ;;  %1240 = vmatprep.mubr.f32.mxu0 %v4078_v29 }
 0x70f   :  { %1194 = vmatprep.subr.mxu0 %v3127_v3 }
 0x710   :  { %1195 = vmatpush1.msra.mxu0 %v3133_v4 }
 0x711   :  { %1196 = vmatprep.subr.mxu0 %v3139_v5 }
 0x712   :  { %1197 = vmatpush1.msra.mxu0 %v3145_v6 }
 0x713   :  { %1198 = vmatprep.subr.mxu0 %v3151_v7 }
 0x714   :  { %1199 = vmatpush1.msra.mxu0 %v3157_v8 }
 0x715   :  { %1200 = vmatprep.subr.mxu0 %v3163_v9 }
 0x716   :  { %1201 = vmatpush1.msra.mxu0 %v3169_v10  ;;  %v2780_v10 = vld [vmem:[%s4055_s0 + $0x38] sm:$0xff] }
 0x717   :  { %1202 = vmatprep.subr.mxu0 %v3175_v11 }
 0x718   :  { %1203 = vmatpush1.msra.mxu0 %v3181_v12 }
 0x719   :  { %1204 = vmatprep.subr.mxu0 %v3187_v13 }
 0x71a   :  { %1205 = vmatpush1.msra.mxu0 %v3193_v14 }
 0x71b   :  { %1206 = vmatprep.subr.mxu0 %v3199_v15 }
 0x71c   :  { %1207 = vmatpush1.msra.mxu0 %v3205_v16  ;;  %v2779_v16 = vld [vmem:[%s4055_s0 + $0x30] sm:$0xff] }
 0x71d   :  { %2781 = vmatmul.mubr.msk.f32.vlgmr.msra.gmra.mxu0 %vm76_vm0, %v942_v0  ;;  %v3651_v0 = vld [vmem:[%s4056_s1 + $0x18] sm:$0xff] }
 0x71e   :  { %1486 = vmatprep.mubr.f32.mxu0 %v4078_v29 }
 0x7bd   :  { %v816_v1 = vpop.f32.mrf.mxu0 }
 0x7be   :  { %v817_v3 = vadd.f32 %v816_v1, %v4081_v34  ;;  %v3657_v1 = vld [vmem:[%s4056_s1 + $0x10] sm:$0xff] }
 0x7bf   :  { %v818_v2 = vpop.f32.mrf.mxu0 }
 0x7c0   :  { %v819_v5 = vadd.f32 %v818_v2, %v4082_v37  ;;  %v3663_v2 = vld [vmem:[%s4056_s1 + $0x8] sm:$0xff] }
 0x7cd   :  { %v1028_v4 = vpop.f32.mrf.mxu0 }
 0x7ce   :  { %v1033_v6 = vadd.f32 %v1028_v4, %v817_v3  ;;  %v3669_v3 = vld [vmem:[%s4056_s1] sm:$0xff] }
 0x7cf   :  { %v1030_v7 = vpop.f32.mrf.mxu0 }
 0x7d0   :  { %v1034_v8 = vadd.f32 %v1030_v7, %v819_v5  ;;  %v2775_v15 = vmul.f32 -1.442695, %v1033_v6 }
 0x7d2   :  { %2894 = vtanh.f32 %v1034_v8  ;;  %v2776_v28 = vmul.f32 -1.442695, %v1034_v8 }
 0x7dd   :  { %v1242_v9 = vpop.f32.mrf.mxu0 }
 0x7de   :  { %v1247_v46 = vadd.f32 %v2779_v16, %v1242_v9 }
 0x7df   :  { %v1244_v11 = vpop.f32.mrf.mxu0  ;;  %v2895_v12 = vpop.eup %2894 }
 0x7e0   :  { %1050 = vrot.lane.b32.xlu1 %v2895_v12, %s3075_s10  ;;  %v1248_v13 = vadd.f32 %v2780_v10, %v1244_v11  ;;  %v2782_v61 = vmul.f32 -1.442695, %v1247_v46 }
 0x7e2   :  { %2896 = vtanh.f32 %v1248_v13  ;;  %v2783_v21 = vmul.f32 -1.442695, %v1248_v13  ;;  %v2790_v13 = vld [vmem:[%s4055_s0 + $0x48] sm:$0xff] }
 0x7e3   :  { %2898 = vpow2.f32 %v2775_v15 }
 0x7e4   :  { %2900 = vpow2.f32 %v2782_v61  ;;  %v2789_v61 = vld [vmem:[%s4055_s0 + $0x40] sm:$0xff] }
 0x7ef   :  { %v2897_v14 = vpop.eup %2896 }
 0x7f0   :  { %1264 = vrot.lane.b32.xlu0 %v2897_v14, %s3075_s10  ;;  %v2899_v20 = vpop.eup %2898 }
 0x7f1   :  { %v1041_v60 = vadd.f32 1.0, %v2899_v20  ;;  %v2901_v62 = vpop.eup %2900 }
 0x7f2   :  { %v1255_v30 = vadd.f32 1.0, %v2901_v62 }
 0x7f3   :  { %2902 = vrcp.f32 %v1041_v60 }
 0x7f4   :  { %2904 = vrcp.f32 %v1255_v30 }
 0x800   :  { %v2903_v22 = vpop.eup %2902 }
 0x801   :  { %v2905_v31 = vpop.eup %2904  ;;  %v1048_v36 = vmul.f32 %v2903_v22, %v3483_v35 }
 0x802   :  { %v1262_v43 = vmul.f32 %v2905_v31, %v3488_v40 }
 0x852   :  { %v1051_v27 = vpop.permute.xlu1 %1050 }
 0x853   :  { %v1053_v23 = vmul.f32 %v2903_v22, %v1051_v27 }
 0x855   :  { %1055 = vrot.lane.b32.xlu1 %v1053_v23, %s3075_s10 }
 0x862   :  { %v1265_v32 = vpop.permute.xlu0 %1264 }
 0x863   :  { %v1267_v33 = vmul.f32 %v2905_v31, %v1265_v32 }
 0x865   :  { %1269 = vrot.lane.b32.xlu0 %v1267_v33, %s3075_s10 }
 0x8c7   :  { %v1056_v38 = vpop.permute.xlu1 %1055 }
 0x8c8   :  { %v3546_v39 = vadd.f32 %v1056_v38, %v1048_v36 }
 0x8ca   :  { %2906 = vtanh.f32 %v3546_v39 }
 0x8d7   :  { %v2907_v42 = vpop.eup %2906  ;;  %v1270_v19 = vpop.permute.xlu0 %1269 }
 0x8d8   :  { %1061 = vrot.lane.b32.xlu1 %v2907_v42, %s3075_s10  ;;  %v3551_v44 = vadd.f32 %v1270_v19, %v1262_v43  ;;  %v3694_v43 = vld [vmem:[#allocation4 + $0x78] sm:$0xff]  ;;  %v3696_v19 = vld [vmem:[#allocation4 + $0x70] sm:$0xff] }
 0x8d9   :  { %1438 = vmatprep.subr.mxu0 %v3694_v43 }
 0x8da   :  { %2908 = vtanh.f32 %v3551_v44  ;;  %1439 = vmatpush1.msra.mxu0 %v3696_v19 }
 0x8db   :  { %2910 = vpow2.f32 %v2776_v28  ;;  %v3701_v28 = vld [vmem:[#allocation4 + $0x60] sm:$0xff] }
 0x8dc   :  { %2912 = vpow2.f32 %v2783_v21  ;;  %v3709_v21 = vld [vmem:[#allocation4 + $0x50] sm:$0xff] }
 0x8e7   :  { %v2909_v25 = vpop.eup %2908 }
 0x8e8   :  { %1275 = vrot.lane.b32.xlu0 %v2909_v25, %s3075_s10  ;;  %v2911_v35 = vpop.eup %2910  ;;  %v3698_v25 = vld [vmem:[#allocation4 + $0x68] sm:$0xff] }
 0x8e9   :  { %v1042_v24 = vadd.f32 1.0, %v2911_v35  ;;  %v2913_v45 = vpop.eup %2912  ;;  %v3705_v35 = vld [vmem:[#allocation4 + $0x58] sm:$0xff]  ;;  %1440 = vmatprep.subr.mxu0 %v3698_v25 }
 0x8ea   :  { %v1256_v40 = vadd.f32 1.0, %v2913_v45  ;;  %1441 = vmatpush1.msra.mxu0 %v3701_v28  ;;  %v3717_v45 = vld [vmem:[#allocation4 + $0x40] sm:$0xff] }
 0x8eb   :  { %2914 = vrcp.f32 %v1042_v24  ;;  %v3713_v24 = vld [vmem:[#allocation4 + $0x48] sm:$0xff]  ;;  %1442 = vmatprep.subr.mxu0 %v3705_v35 }
 0x8ec   :  { %2916 = vrcp.f32 %v1256_v40  ;;  %1443 = vmatpush1.msra.mxu0 %v3709_v21  ;;  %v3733_v40 = vld [vmem:[#allocation4 + $0x20] sm:$0xff] }
 0x8ed   :  { %1444 = vmatprep.subr.mxu0 %v3713_v24 }
 0x8ee   :  { %1445 = vmatpush1.msra.mxu0 %v3717_v45 }
 0x8f8   :  { %v2915_v26 = vpop.eup %2914 }
 0x94a   :  { %v1062_v41 = vpop.permute.xlu1 %1061 }
 0x94b   :  { %v1064_v18 = vmul.f32 %v2915_v26, %v1062_v41  ;;  %v3721_v26 = vld [vmem:[#allocation4 + $0x38] sm:$0xff]  ;;  %v3725_v41 = vld [vmem:[#allocation4 + $0x30] sm:$0xff] }
 0x94c   :  { %1446 = vmatprep.subr.mxu0 %v3721_v26 }
 0x94d   :  { %2777 = vst.msk [vmem:[%s4060_s5 + $0x10] sm:$0xff] %vm76_vm0, %v1064_v18  ;;  %2778 = vmatmul.mubr.msk.f32.vlgmr.msra.gmra.mxu1 %vm76_vm0, %v1064_v18  ;;  %v3729_v18 = vld [vmem:[#allocation4 + $0x28] sm:$0xff]  ;;  %1447 = vmatpush1.msra.mxu0 %v3725_v41 }
 0x94e   :  { %1315 = vmatpush1.msra.mxu1 %v3289_v47  ;;  %1362 = vmatprep.mubr.f32.mxu1 %v4078_v29  ;;  %v3577_v47 = vld [vmem:[%s4056_s1 + $0x78] sm:$0xff] }
 0x94f   :  { %1316 = vmatprep.subr.mxu1 %v3293_v48  ;;  %v2917_v48 = vpop.eup %2916  ;;  %1448 = vmatprep.subr.mxu0 %v3729_v18 }
 0x950   :  { %1317 = vmatpush1.msra.mxu1 %v3298_v49  ;;  %1449 = vmatpush1.msra.mxu0 %v3733_v40 }
 0x951   :  { %1318 = vmatprep.subr.mxu1 %v3301_v50 }
 0x952   :  { %1319 = vmatpush1.msra.mxu1 %v3305_v51  ;;  %v3585_v51 = vld [vmem:[%s4056_s1 + $0x70] sm:$0xff] }
 0x953   :  { %1320 = vmatprep.subr.mxu1 %v3309_v52  ;;  %v3590_v52 = vld [vmem:[%s4056_s1 + $0x68] sm:$0xff] }
 0x954   :  { %1321 = vmatpush1.msra.mxu1 %v3312_v53  ;;  %v3596_v53 = vld [vmem:[%s4056_s1 + $0x60] sm:$0xff] }
 0x955   :  { %1322 = vmatprep.subr.mxu1 %v3315_v54  ;;  %v3602_v54 = vld [vmem:[%s4056_s1 + $0x58] sm:$0xff] }
 0x956   :  { %1323 = vmatpush1.msra.mxu1 %v3318_v55  ;;  %v3609_v55 = vld [vmem:[%s4056_s1 + $0x50] sm:$0xff] }
 0x957   :  { %1324 = vmatprep.subr.mxu1 %v3321_v56  ;;  %v3615_v56 = vld [vmem:[%s4056_s1 + $0x48] sm:$0xff] }
 0x958   :  { %1325 = vmatpush1.msra.mxu1 %v3324_v57  ;;  %v3621_v57 = vld [vmem:[%s4056_s1 + $0x40] sm:$0xff] }
 0x959   :  { %1326 = vmatprep.subr.mxu1 %v3327_v58  ;;  %v3627_v58 = vld [vmem:[%s4056_s1 + $0x38] sm:$0xff] }
 0x95a   :  { %1327 = vmatpush1.msra.mxu1 %v3330_v59  ;;  %v1276_v49 = vpop.permute.xlu0 %1275  ;;  %v3633_v59 = vld [vmem:[%s4056_s1 + $0x30] sm:$0xff] }
 0x95b   :  { %1328 = vmatprep.subr.mxu1 %v3338_v63  ;;  %v1278_v50 = vmul.f32 %v2917_v48, %v1276_v49  ;;  %v3639_v63 = vld [vmem:[%s4056_s1 + $0x28] sm:$0xff]  ;;  %v3737_v48 = vld [vmem:[#allocation4 + $0x18] sm:$0xff]  ;;  %v3741_v49 = vld [vmem:[#allocation4 + $0x10] sm:$0xff] }
 0x95c   :  { %1329 = vmatpush1.msra.mxu1 %v3342_v17  ;;  %v3645_v17 = vld [vmem:[%s4056_s1 + $0x20] sm:$0xff]  ;;  %1450 = vmatprep.subr.mxu0 %v3737_v48 }
 0x95d   :  { %1528 = vmatprep.subr.mxu1 %v3577_v47  ;;  %2784 = vmatmul.mubr.msk.f32.vlgmr.msra.gmra.mxu1 %vm76_vm0, %v1278_v50 }
 0x95e   :  { %1529 = vmatpush1.msra.mxu1 %v3585_v51  ;;  %1576 = vmatprep.mubr.f32.mxu1 %v4078_v29 }
 0x95f   :  { %1530 = vmatprep.subr.mxu1 %v3590_v52  ;;  %1451 = vmatpush1.msra.mxu0 %v3741_v49 }
 0x960   :  { %1531 = vmatpush1.msra.mxu1 %v3596_v53 }
 0x961   :  { %1532 = vmatprep.subr.mxu1 %v3602_v54 }
 0x962   :  { %1533 = vmatpush1.msra.mxu1 %v3609_v55 }
 0x963   :  { %1534 = vmatprep.subr.mxu1 %v3615_v56 }
 0x964   :  { %1535 = vmatpush1.msra.mxu1 %v3621_v57 }
 0x965   :  { %1536 = vmatprep.subr.mxu1 %v3627_v58 }
 0x966   :  { %1537 = vmatpush1.msra.mxu1 %v3633_v59 }
 0x967   :  { %1538 = vmatprep.subr.mxu1 %v3639_v63 }
 0x968   :  { %1539 = vmatpush1.msra.mxu1 %v3645_v17 }
 0x969   :  { %1540 = vmatprep.subr.mxu1 %v3651_v0 }
 0x96a   :  { %1541 = vmatpush1.msra.mxu1 %v3657_v1 }
 0x96b   :  { %1542 = vmatprep.subr.mxu1 %v3663_v2 }
 0x96c   :  { %1543 = vmatpush1.msra.mxu1 %v3669_v3 }
 0x96d   :  { %2791 = vmatmul.mubr.msk.f32.vlgmr.msra.gmra.mxu1 %vm76_vm0, %v1278_v50  ;;  %1774 = vmatprep.subr.mxu1 %v3694_v43  ;;  %v3745_v50 = vld [vmem:[#allocation4 + $0x8] sm:$0xff] }
 0x96e   :  { %1822 = vmatprep.mubr.f32.mxu1 %v4078_v29  ;;  %1775 = vmatpush1.msra.mxu1 %v3696_v19  ;;  %4083 = vst [vmem:[#allocation8_spill] sm:$0xff] %v3745_v50 }
 0x96f   :  { %1776 = vmatprep.subr.mxu1 %v3698_v25  ;;  %1452 = vmatprep.subr.mxu0 %v3745_v50 }
 0x970   :  { %1777 = vmatpush1.msra.mxu1 %v3701_v28 }
 0x971   :  { %1778 = vmatprep.subr.mxu1 %v3705_v35 }
 0x972   :  { %1779 = vmatpush1.msra.mxu1 %v3709_v21 }
 0x973   :  { %1780 = vmatprep.subr.mxu1 %v3713_v24 }
 0x974   :  { %1781 = vmatpush1.msra.mxu1 %v3717_v45 }
 0x975   :  { %1782 = vmatprep.subr.mxu1 %v3721_v26 }
 0x976   :  { %1783 = vmatpush1.msra.mxu1 %v3725_v41 }
 0x977   :  { %1784 = vmatprep.subr.mxu1 %v3729_v18 }
 0x978   :  { %1785 = vmatpush1.msra.mxu1 %v3733_v40 }
 0x979   :  { %1786 = vmatprep.subr.mxu1 %v3737_v48 }
 0x97a   :  { %1787 = vmatpush1.msra.mxu1 %v3741_v49 }
 0x97b   :  { %1788 = vmatprep.subr.mxu1 %v3745_v50 }
 0xa0d   :  { %v1152_v4 = vpop.f32.mrf.mxu1 }
 0xa0e   :  { %v1153_v6 = vadd.f32 %v1152_v4, %v4081_v34 }
 0xa0f   :  { %v1154_v5 = vpop.f32.mrf.mxu1 }
 0xa10   :  { %v1155_v8 = vadd.f32 %v1154_v5, %v4082_v37 }
 0xa1d   :  { %v1364_v7 = vpop.f32.mrf.mxu1 }
 0xa1e   :  { %v1369_v9 = vadd.f32 %v1364_v7, %v1153_v6  ;;  %v3758_v7 = vld [vmem:[#allocation4] sm:$0xff] }
 0xa1f   :  { %v1366_v10 = vpop.f32.mrf.mxu1  ;;  %4084 = vst [vmem:[#allocation9_spill] sm:$0xff] %v3758_v7  ;;  %1453 = vmatpush1.msra.mxu0 %v3758_v7  ;;  %1789 = vmatpush1.msra.mxu1 %v3758_v7 }
 0xa20   :  { %v3678_v11 = vadd.f32 %v1366_v10, %v1155_v8  ;;  %v2785_v20 = vmul.f32 -1.442695, %v1369_v9  ;;  %v3760_v8 = vld [vmem:[#allocation2 + $0x78] sm:$0xff] }
 0xa21   :  { %4085 = vst [vmem:[#allocation12_spill] sm:$0xff] %v3760_v8  ;;  %1650 = vmatprep.subr.mxu0 %v3760_v8  ;;  %1986 = vmatprep.subr.mxu1 %v3760_v8 }
 0xa22   :  { %2918 = vtanh.f32 %v3678_v11 }
 0xa2d   :  { %v1578_v12 = vpop.f32.mrf.mxu1 }
 0xa2e   :  { %v1583_v60 = vadd.f32 %v2789_v61, %v1578_v12 }
 0xa2f   :  { %v1580_v14 = vpop.f32.mrf.mxu1  ;;  %v2919_v15 = vpop.eup %2918 }
 0xa30   :  { %1386 = vrot.lane.b32.xlu1 %v2919_v15, %s3075_s10  ;;  %v3685_v16 = vadd.f32 %v2790_v13, %v1580_v14  ;;  %v2792_v22 = vmul.f32 -1.442695, %v1583_v60  ;;  %v2786_v14 = vmul.f32 -1.442695, %v3678_v11  ;;  %v3783_v11 = vld [vmem:[#allocation2 + $0x60] sm:$0xff] }
 0xa32   :  { %2920 = vtanh.f32 %v3685_v16 }
 0xa33   :  { %2922 = vpow2.f32 %v2785_v20 }
 0xa34   :  { %2924 = vpow2.f32 %v2792_v22  ;;  %v3774_v22 = vld [vmem:[#allocation2 + $0x70] sm:$0xff] }
 0xa3f   :  { %v2921_v46 = vpop.eup %2920 }
 0xa40   :  { %1600 = vrot.lane.b32.xlu0 %v2921_v46, %s3075_s10  ;;  %v2923_v62 = vpop.eup %2922  ;;  %v2793_v46 = vmul.f32 -1.442695, %v3685_v16  ;;  %v3786_v16 = vld [vmem:[#allocation2 + $0x58] sm:$0xff] }
 0xa41   :  { %v1377_v27 = vadd.f32 1.0, %v2923_v62  ;;  %v2925_v23 = vpop.eup %2924 }
 0xa42   :  { %v1591_v33 = vadd.f32 1.0, %v2925_v23  ;;  %v3776_v23 = vld [vmem:[#allocation2 + $0x68] sm:$0xff] }
 0xa43   :  { %2926 = vrcp.f32 %v1377_v27 }
 0xa44   :  { %2928 = vrcp.f32 %v1591_v33  ;;  %v3799_v33 = vld [vmem:[#allocation2 + $0x38] sm:$0xff] }
 0xa50   :  { %v2927_v30 = vpop.eup %2926 }
 0xa51   :  { %v2929_v36 = vpop.eup %2928  ;;  %v1384_v4 = vmul.f32 %v2927_v30, %v3546_v39 }
 0xa52   :  { %v1598_v39 = vmul.f32 %v2929_v36, %v3551_v44 }
 0xaa2   :  { %v1387_v31 = vpop.permute.xlu1 %1386 }
 0xaa3   :  { %v1389_v32 = vmul.f32 %v2927_v30, %v1387_v31  ;;  %v3790_v30 = vld [vmem:[#allocation2 + $0x50] sm:$0xff]  ;;  %v3793_v31 = vld [vmem:[#allocation2 + $0x48] sm:$0xff] }
 0xaa5   :  { %1391 = vrot.lane.b32.xlu1 %v1389_v32, %s3075_s10  ;;  %v3796_v32 = vld [vmem:[#allocation2 + $0x40] sm:$0xff] }
 0xab2   :  { %v1601_v38 = vpop.permute.xlu0 %1600 }
 0xab3   :  { %v1603_v42 = vmul.f32 %v2929_v36, %v1601_v38  ;;  %v3802_v36 = vld [vmem:[#allocation2 + $0x30] sm:$0xff]  ;;  %v3805_v38 = vld [vmem:[#allocation2 + $0x28] sm:$0xff] }
 0xab5   :  { %1605 = vrot.lane.b32.xlu0 %v1603_v42, %s3075_s10  ;;  %v3808_v42 = vld [vmem:[#allocation2 + $0x20] sm:$0xff] }
 0xb17   :  { %v1392_v5 = vpop.permute.xlu1 %1391 }
 0xb18   :  { %v3755_v6 = vadd.f32 %v1392_v5, %v1384_v4  ;;  %v3811_v4 = vld [vmem:[#allocation2 + $0x18] sm:$0xff]  ;;  %v3814_v5 = vld [vmem:[#allocation2 + $0x10] sm:$0xff] }
 0xb1a   :  { %2930 = vtanh.f32 %v3755_v6 }
 0xb27   :  { %v2931_v9 = vpop.eup %2930  ;;  %v1606_v10 = vpop.permute.xlu0 %1605 }
 0xb28   :  { %1397 = vrot.lane.b32.xlu1 %v2931_v9, %s3075_s10  ;;  %v3768_v12 = vadd.f32 %v1606_v10, %v1598_v39  ;;  %v3817_v9 = vld [vmem:[#allocation2 + $0x8] sm:$0xff]  ;;  %v3820_v39 = vld [vmem:[#allocation2] sm:$0xff] }
 0xb2a   :  { %2932 = vtanh.f32 %v3768_v12 }
 0xb2b   :  { %2934 = vpow2.f32 %v2786_v14 }
 0xb2c   :  { %2936 = vpow2.f32 %v2793_v46 }
 0xb37   :  { %v2933_v13 = vpop.eup %2932 }
 0xb38   :  { %1611 = vrot.lane.b32.xlu0 %v2933_v13, %s3075_s10  ;;  %v2935_v15 = vpop.eup %2934 }
 0xb39   :  { %v1378_v20 = vadd.f32 1.0, %v2935_v15  ;;  %v2937_v61 = vpop.eup %2936 }
 0xb3a   :  { %v1592_v27 = vadd.f32 1.0, %v2937_v61 }
 0xb3b   :  { %2938 = vrcp.f32 %v1378_v20 }
 0xb3c   :  { %2940 = vrcp.f32 %v1592_v27 }
 0xb48   :  { %v2939_v60 = vpop.eup %2938 }
 0xb49   :  { %v2941_v10 = vpop.eup %2940 }
 0xb9a   :  { %v1398_v44 = vpop.permute.xlu1 %1397 }
 0xb9b   :  { %v1400_v62 = vmul.f32 %v2939_v60, %v1398_v44 }
 0xb9d   :  { %2787 = vst.msk [vmem:[%s4060_s5 + $0x18] sm:$0xff] %vm76_vm0, %v1400_v62  ;;  %2788 = vmatmul.mubr.msk.f32.vlgmr.msra.gmra.mxu0 %vm76_vm0, %v1400_v62 }
 0xb9e   :  { %1651 = vmatpush1.msra.mxu0 %v3774_v22  ;;  %1698 = vmatprep.mubr.f32.mxu0 %v4078_v29 }
 0xb9f   :  { %1652 = vmatprep.subr.mxu0 %v3776_v23 }
 0xba0   :  { %1653 = vmatpush1.msra.mxu0 %v3783_v11 }
 0xba1   :  { %1654 = vmatprep.subr.mxu0 %v3786_v16 }
 0xba2   :  { %1655 = vmatpush1.msra.mxu0 %v3790_v30 }
 0xba3   :  { %1656 = vmatprep.subr.mxu0 %v3793_v31 }
 0xba4   :  { %1657 = vmatpush1.msra.mxu0 %v3796_v32 }
 0xba5   :  { %1658 = vmatprep.subr.mxu0 %v3799_v33 }
 0xba6   :  { %1659 = vmatpush1.msra.mxu0 %v3802_v36 }
 0xba7   :  { %1660 = vmatprep.subr.mxu0 %v3805_v38 }
 0xba8   :  { %1661 = vmatpush1.msra.mxu0 %v3808_v42 }
 0xba9   :  { %1662 = vmatprep.subr.mxu0 %v3811_v4 }
 0xbaa   :  { %1663 = vmatpush1.msra.mxu0 %v3814_v5  ;;  %v1612_v13 = vpop.permute.xlu0 %1611 }
 0xbab   :  { %1664 = vmatprep.subr.mxu0 %v3817_v9  ;;  %v1614_v14 = vmul.f32 %v2941_v10, %v1612_v13  ;;  %v2800_v13 = vld [vmem:[%s4055_s0 + $0x58] sm:$0xff] }
 0xbac   :  { %1665 = vmatpush1.msra.mxu0 %v3820_v39 }
 0xbad   :  { %1864 = vmatprep.subr.mxu0 %v3577_v47  ;;  %2794 = vmatmul.mubr.msk.f32.vlgmr.msra.gmra.mxu0 %vm76_vm0, %v1614_v14 }
 0xbae   :  { %1865 = vmatpush1.msra.mxu0 %v3585_v51  ;;  %1912 = vmatprep.mubr.f32.mxu0 %v4078_v29 }
 0xbaf   :  { %1866 = vmatprep.subr.mxu0 %v3590_v52 }
 0xbb0   :  { %1867 = vmatpush1.msra.mxu0 %v3596_v53 }
 0xbb1   :  { %1868 = vmatprep.subr.mxu0 %v3602_v54 }
 0xbb2   :  { %1869 = vmatpush1.msra.mxu0 %v3609_v55 }
 0xbb3   :  { %1870 = vmatprep.subr.mxu0 %v3615_v56 }
 0xbb4   :  { %1871 = vmatpush1.msra.mxu0 %v3621_v57 }
 0xbb5   :  { %1872 = vmatprep.subr.mxu0 %v3627_v58 }
 0xbb6   :  { %1873 = vmatpush1.msra.mxu0 %v3633_v59 }
 0xbb7   :  { %1874 = vmatprep.subr.mxu0 %v3639_v63 }
 0xbb8   :  { %1875 = vmatpush1.msra.mxu0 %v3645_v17 }
 0xbb9   :  { %1876 = vmatprep.subr.mxu0 %v3651_v0 }
 0xbba   :  { %1877 = vmatpush1.msra.mxu0 %v3657_v1 }
 0xbbb   :  { %1878 = vmatprep.subr.mxu0 %v3663_v2 }
 0xbbc   :  { %1879 = vmatpush1.msra.mxu0 %v3669_v3 }
 0xbbd   :  { %2801 = vmatmul.mubr.msk.f32.vlgmr.msra.gmra.mxu0 %vm76_vm0, %v1614_v14  ;;  %2110 = vmatprep.subr.mxu0 %v3694_v43 }
 0xbbe   :  { %2111 = vmatpush1.msra.mxu0 %v3696_v19  ;;  %2158 = vmatprep.mubr.f32.mxu0 %v4078_v29 }
 0xbbf   :  { %2112 = vmatprep.subr.mxu0 %v3698_v25 }
 0xbc0   :  { %2113 = vmatpush1.msra.mxu0 %v3701_v28 }
 0xbc1   :  { %2114 = vmatprep.subr.mxu0 %v3705_v35 }
 0xbc2   :  { %2115 = vmatpush1.msra.mxu0 %v3709_v21 }
 0xbc3   :  { %2116 = vmatprep.subr.mxu0 %v3713_v24 }
 0xbc4   :  { %2117 = vmatpush1.msra.mxu0 %v3717_v45 }
 0xbc5   :  { %2118 = vmatprep.subr.mxu0 %v3721_v26 }
 0xbc6   :  { %2119 = vmatpush1.msra.mxu0 %v3725_v41 }
 0xbc7   :  { %2120 = vmatprep.subr.mxu0 %v3729_v18 }
 0xbc8   :  { %2121 = vmatpush1.msra.mxu0 %v3733_v40 }
 0xbc9   :  { %2122 = vmatprep.subr.mxu0 %v3737_v48 }
 0xbca   :  { %2123 = vmatpush1.msra.mxu0 %v3741_v49 }
 0xbcb   :  { %2124 = vmatprep.subr.mxu0 %v3745_v50 }
 0xbcc   :  { %2125 = vmatpush1.msra.mxu0 %v3758_v7 }
 0xbcd   :  { %2322 = vmatprep.subr.mxu0 %v3760_v8 }
 0xc5d   :  { %v1488_v15 = vpop.f32.mrf.mxu0 }
 0xc5e   :  { %v1489_v20 = vadd.f32 %v1488_v15, %v4081_v34 }
 0xc5f   :  { %v1490_v46 = vpop.f32.mrf.mxu0 }
 0xc60   :  { %v1491_v60 = vadd.f32 %v1490_v46, %v4082_v37  ;;  %v2799_v46 = vld [vmem:[%s4055_s0 + $0x50] sm:$0xff] }
 0xc6d   :  { %v1700_v61 = vpop.f32.mrf.mxu0 }
 0xc6e   :  { %v1705_v44 = vadd.f32 %v1700_v61, %v1489_v20 }
 0xc6f   :  { %v1702_v62 = vpop.f32.mrf.mxu0 }
 0xc70   :  { %v1706_v27 = vadd.f32 %v1702_v62, %v1491_v60  ;;  %v2795_v15 = vmul.f32 -1.442695, %v1705_v44 }
 0xc72   :  { %2942 = vtanh.f32 %v1706_v27 }
 0xc7d   :  { %v1914_v10 = vpop.f32.mrf.mxu0 }
 0xc7e   :  { %v1919_v20 = vadd.f32 %v2799_v46, %v1914_v10 }
 0xc7f   :  { %v1916_v14 = vpop.f32.mrf.mxu0  ;;  %v2943_v7 = vpop.eup %2942 }
 0xc80   :  { %1722 = vrot.lane.b32.xlu1 %v2943_v7, %s3075_s10  ;;  %v1920_v8 = vadd.f32 %v2800_v13, %v1916_v14  ;;  %v2802_v60 = vmul.f32 -1.442695, %v1919_v20 }
 0xc82   :  { %2944 = vtanh.f32 %v1920_v8 }
 0xc83   :  { %2946 = vpow2.f32 %v2795_v15 }
 0xc84   :  { %2948 = vpow2.f32 %v2802_v60 }
 0xc8f   :  { %v2945_v50 = vpop.eup %2944 }
 0xc90   :  { %1936 = vrot.lane.b32.xlu0 %v2945_v50, %s3075_s10  ;;  %v2947_v61 = vpop.eup %2946 }
 0xc91   :  { %v1713_v62 = vadd.f32 1.0, %v2947_v61  ;;  %v2949_v37 = vpop.eup %2948 }
 0xc92   :  { %v1927_v14 = vadd.f32 1.0, %v2949_v37 }
 0xc93   :  { %2950 = vrcp.f32 %v1713_v62 }
 0xc94   :  { %2952 = vrcp.f32 %v1927_v14 }
 0xca0   :  { %v2951_v34 = vpop.eup %2950 }
 0xca1   :  { %v2953_v50 = vpop.eup %2952  ;;  %v1720_v10 = vmul.f32 %v2951_v34, %v3755_v6  ;;  %v2803_v6 = vmul.f32 -1.442695, %v1920_v8 }
 0xca2   :  { %v1934_v37 = vmul.f32 %v2953_v50, %v3768_v12 }
 0xcf2   :  { %v1723_v7 = vpop.permute.xlu1 %1722 }
 0xcf3   :  { %v1725_v13 = vmul.f32 %v2951_v34, %v1723_v7 }
 0xcf5   :  { %1727 = vrot.lane.b32.xlu1 %v1725_v13, %s3075_s10  ;;  %v2796_v13 = vmul.f32 -1.442695, %v1706_v27 }
 0xd02   :  { %v1937_v44 = vpop.permute.xlu0 %1936 }
 0xd03   :  { %v1939_v15 = vmul.f32 %v2953_v50, %v1937_v44 }
 0xd05   :  { %1941 = vrot.lane.b32.xlu0 %v1939_v15, %s3075_s10 }
 0xd67   :  { %v1728_v46 = vpop.permute.xlu1 %1727 }
 0xd68   :  { %v3875_v20 = vadd.f32 %v1728_v46, %v1720_v10 }
 0xd6a   :  { %2954 = vtanh.f32 %v3875_v20 }
 0xd77   :  { %v2955_v61 = vpop.eup %2954  ;;  %v1942_v60 = vpop.permute.xlu0 %1941 }
 0xd78   :  { %1733 = vrot.lane.b32.xlu1 %v2955_v61, %s3075_s10  ;;  %v3880_v62 = vadd.f32 %v1942_v60, %v1934_v37 }
 0xd7a   :  { %2956 = vtanh.f32 %v3880_v62 }
 0xd7b   :  { %2958 = vpow2.f32 %v2796_v13 }
 0xd7c   :  { %2960 = vpow2.f32 %v2803_v6  ;;  %v2809_v6 = vld [vmem:[%s4055_s0 + $0x60] sm:$0xff] }
 0xd87   :  { %v2957_v7 = vpop.eup %2956 }
 0xd88   :  { %1947 = vrot.lane.b32.xlu0 %v2957_v7, %s3075_s10  ;;  %v2959_v34 = vpop.eup %2958 }
 0xd89   :  { %v1714_v14 = vadd.f32 1.0, %v2959_v34  ;;  %v2961_v44 = vpop.eup %2960 }
 0xd8a   :  { %v1928_v12 = vadd.f32 1.0, %v2961_v44 }
 0xd8b   :  { %2962 = vrcp.f32 %v1714_v14 }
 0xd8c   :  { %2964 = vrcp.f32 %v1928_v12 }
 0xd98   :  { %v2963_v15 = vpop.eup %2962 }
 0xd99   :  { %v2965_v8 = vpop.eup %2964 }
 0xdea   :  { %v1734_v10 = vpop.permute.xlu1 %1733 }
 0xdeb   :  { %v1736_v46 = vmul.f32 %v2963_v15, %v1734_v10 }
 0xded   :  { %2797 = vst.msk [vmem:[%s4060_s5 + $0x20] sm:$0xff] %vm76_vm0, %v1736_v46  ;;  %2798 = vmatmul.mubr.msk.f32.vlgmr.msra.gmra.mxu1 %vm76_vm0, %v1736_v46 }
 0xdee   :  { %1987 = vmatpush1.msra.mxu1 %v3774_v22  ;;  %2034 = vmatprep.mubr.f32.mxu1 %v4078_v29 }
 0xdef   :  { %1988 = vmatprep.subr.mxu1 %v3776_v23 }
 0xdf0   :  { %1989 = vmatpush1.msra.mxu1 %v3783_v11 }
 0xdf1   :  { %1990 = vmatprep.subr.mxu1 %v3786_v16 }
 0xdf2   :  { %1991 = vmatpush1.msra.mxu1 %v3790_v30 }
 0xdf3   :  { %1992 = vmatprep.subr.mxu1 %v3793_v31 }
 0xdf4   :  { %1993 = vmatpush1.msra.mxu1 %v3796_v32 }
 0xdf5   :  { %1994 = vmatprep.subr.mxu1 %v3799_v33 }
 0xdf6   :  { %1995 = vmatpush1.msra.mxu1 %v3802_v36 }
 0xdf7   :  { %1996 = vmatprep.subr.mxu1 %v3805_v38 }
 0xdf8   :  { %1997 = vmatpush1.msra.mxu1 %v3808_v42 }
 0xdf9   :  { %1998 = vmatprep.subr.mxu1 %v3811_v4 }
 0xdfa   :  { %1999 = vmatpush1.msra.mxu1 %v3814_v5  ;;  %v1948_v27 = vpop.permute.xlu0 %1947 }
 0xdfb   :  { %2000 = vmatprep.subr.mxu1 %v3817_v9  ;;  %v1950_v50 = vmul.f32 %v2965_v8, %v1948_v27 }
 0xdfc   :  { %2001 = vmatpush1.msra.mxu1 %v3820_v39 }
 0xdfd   :  { %2200 = vmatprep.subr.mxu1 %v3577_v47  ;;  %2804 = vmatmul.mubr.msk.f32.vlgmr.msra.gmra.mxu1 %vm76_vm0, %v1950_v50 }
 0xdfe   :  { %2201 = vmatpush1.msra.mxu1 %v3585_v51  ;;  %2248 = vmatprep.mubr.f32.mxu1 %v4078_v29 }
 0xdff   :  { %2202 = vmatprep.subr.mxu1 %v3590_v52 }
 0xe00   :  { %2203 = vmatpush1.msra.mxu1 %v3596_v53 }
 0xe01   :  { %2204 = vmatprep.subr.mxu1 %v3602_v54 }
 0xe02   :  { %2205 = vmatpush1.msra.mxu1 %v3609_v55 }
 0xe03   :  { %2206 = vmatprep.subr.mxu1 %v3615_v56 }
 0xe04   :  { %2207 = vmatpush1.msra.mxu1 %v3621_v57 }
 0xe05   :  { %2208 = vmatprep.subr.mxu1 %v3627_v58 }
 0xe06   :  { %2209 = vmatpush1.msra.mxu1 %v3633_v59 }
 0xe07   :  { %2210 = vmatprep.subr.mxu1 %v3639_v63 }
 0xe08   :  { %2211 = vmatpush1.msra.mxu1 %v3645_v17 }
 0xe09   :  { %2212 = vmatprep.subr.mxu1 %v3651_v0 }
 0xe0a   :  { %2213 = vmatpush1.msra.mxu1 %v3657_v1 }
 0xe0b   :  { %2214 = vmatprep.subr.mxu1 %v3663_v2 }
 0xe0c   :  { %2215 = vmatpush1.msra.mxu1 %v3669_v3 }
 0xe0d   :  { %2811 = vmatmul.mubr.msk.f32.vlgmr.msra.gmra.mxu1 %vm76_vm0, %v1950_v50  ;;  %2446 = vmatprep.subr.mxu1 %v3694_v43  ;;  %v4086_v43 = vld [vmem:[#allocation8_spill] sm:$0xff] }
 0xe0e   :  { %2447 = vmatpush1.msra.mxu1 %v3696_v19  ;;  %2494 = vmatprep.mubr.f32.mxu1 %v4078_v29  ;;  %v4087_v19 = vld [vmem:[#allocation9_spill] sm:$0xff] }
 0xe0f   :  { %2448 = vmatprep.subr.mxu1 %v3698_v25  ;;  %v4088_v25 = vld [vmem:[#allocation12_spill] sm:$0xff] }
 0xe10   :  { %2449 = vmatpush1.msra.mxu1 %v3701_v28 }
 0xe11   :  { %2450 = vmatprep.subr.mxu1 %v3705_v35 }
 0xe12   :  { %2451 = vmatpush1.msra.mxu1 %v3709_v21  ;;  %v4089_v21 = vld [vmem:[#allocation10_spill] sm:$0xff] }
 0xe13   :  { %2452 = vmatprep.subr.mxu1 %v3713_v24 }
 0xe14   :  { %2453 = vmatpush1.msra.mxu1 %v3717_v45 }
 0xe15   :  { %2454 = vmatprep.subr.mxu1 %v3721_v26  ;;  %v4090_v26 = vld [vmem:[#allocation11_spill] sm:$0xff] }
 0xe16   :  { %2455 = vmatpush1.msra.mxu1 %v3725_v41 }
 0xe17   :  { %2456 = vmatprep.subr.mxu1 %v3729_v18 }
 0xe18   :  { %2457 = vmatpush1.msra.mxu1 %v3733_v40 }
 0xe19   :  { %2458 = vmatprep.subr.mxu1 %v3737_v48 }
 0xe1a   :  { %2459 = vmatpush1.msra.mxu1 %v3741_v49  ;;  %v2810_v49 = vld [vmem:[%s4055_s0 + $0x68] sm:$0xff] }
 0xe1b   :  { %2460 = vmatprep.subr.mxu1 %v4086_v43 }
 0xe1c   :  { %2461 = vmatpush1.msra.mxu1 %v4087_v19 }
 0xe1d   :  { %2658 = vmatprep.subr.mxu1 %v4088_v25 }
 0xead   :  { %v1824_v28 = vpop.f32.mrf.mxu1 }
 0xeae   :  { %v1825_v24 = vadd.f32 %v1824_v28, %v4089_v21 }
 0xeaf   :  { %v1826_v35 = vpop.f32.mrf.mxu1 }
 0xeb0   :  { %v1827_v41 = vadd.f32 %v1826_v35, %v4090_v26 }
 0xebd   :  { %v2036_v45 = vpop.f32.mrf.mxu1 }
 0xebe   :  { %v2041_v18 = vadd.f32 %v2036_v45, %v1825_v24 }
 0xebf   :  { %v2038_v61 = vpop.f32.mrf.mxu1 }
 0xec0   :  { %v2042_v40 = vadd.f32 %v2038_v61, %v1827_v41  ;;  %v2805_v34 = vmul.f32 -1.442695, %v2041_v18 }
 0xec2   :  { %2966 = vtanh.f32 %v2042_v40 }
 0xecd   :  { %v2250_v48 = vpop.f32.mrf.mxu1 }
 0xece   :  { %v2255_v14 = vadd.f32 %v2809_v6, %v2250_v48 }
 0xecf   :  { %v2252_v37 = vpop.f32.mrf.mxu1  ;;  %v2967_v60 = vpop.eup %2966 }
 0xed0   :  { %2058 = vrot.lane.b32.xlu1 %v2967_v60, %s3075_s10  ;;  %v2256_v7 = vadd.f32 %v2810_v49, %v2252_v37  ;;  %v2812_v15 = vmul.f32 -1.442695, %v2255_v14  ;;  %v2806_v49 = vmul.f32 -1.442695, %v2042_v40 }
 0xed2   :  { %2968 = vtanh.f32 %v2256_v7  ;;  %v2813_v37 = vmul.f32 -1.442695, %v2256_v7 }
 0xed3   :  { %2970 = vpow2.f32 %v2805_v34 }
 0xed4   :  { %2972 = vpow2.f32 %v2812_v15 }
 0xedf   :  { %v2969_v13 = vpop.eup %2968 }
 0xee0   :  { %2272 = vrot.lane.b32.xlu0 %v2969_v13, %s3075_s10  ;;  %v2971_v44 = vpop.eup %2970 }
 0xee1   :  { %v2049_v10 = vadd.f32 1.0, %v2971_v44  ;;  %v2973_v46 = vpop.eup %2972 }
 0xee2   :  { %v2263_v50 = vadd.f32 1.0, %v2973_v46 }
 0xee3   :  { %2974 = vrcp.f32 %v2049_v10 }
 0xee4   :  { %2976 = vrcp.f32 %v2263_v50 }
 0xef0   :  { %v2975_v12 = vpop.eup %2974 }
 0xef1   :  { %v2977_v43 = vpop.eup %2976  ;;  %v2056_v28 = vmul.f32 %v2975_v12, %v3875_v20 }
 0xef2   :  { %v2270_v41 = vmul.f32 %v2977_v43, %v3880_v62 }
 0xf42   :  { %v2059_v8 = vpop.permute.xlu1 %2058 }
 0xf43   :  { %v2061_v27 = vmul.f32 %v2975_v12, %v2059_v8 }
 0xf45   :  { %2063 = vrot.lane.b32.xlu1 %v2061_v27, %s3075_s10 }
 0xf52   :  { %v2273_v19 = vpop.permute.xlu0 %2272 }
 0xf53   :  { %v2275_v25 = vmul.f32 %v2977_v43, %v2273_v19 }
 0xf55   :  { %2277 = vrot.lane.b32.xlu0 %v2275_v25, %s3075_s10 }
 0xfb7   :  { %v2064_v35 = vpop.permute.xlu1 %2063 }
 0xfb8   :  { %v3955_v24 = vadd.f32 %v2064_v35, %v2056_v28 }
 0xfba   :  { %2978 = vtanh.f32 %v3955_v24 }
 0xfc7   :  { %v2979_v45 = vpop.eup %2978  ;;  %v2278_v18 = vpop.permute.xlu0 %2277 }
 0xfc8   :  { %2069 = vrot.lane.b32.xlu1 %v2979_v45, %s3075_s10  ;;  %v3960_v61 = vadd.f32 %v2278_v18, %v2270_v41 }
 0xfca   :  { %2980 = vtanh.f32 %v3960_v61 }
 0xfcb   :  { %2982 = vpow2.f32 %v2806_v49 }
 0xfcc   :  { %2984 = vpow2.f32 %v2813_v37 }
 0xfd7   :  { %v2981_v48 = vpop.eup %2980 }
 0xfd8   :  { %2283 = vrot.lane.b32.xlu0 %v2981_v48, %s3075_s10  ;;  %v2983_v20 = vpop.eup %2982 }
 0xfd9   :  { %v2050_v60 = vadd.f32 1.0, %v2983_v20  ;;  %v2985_v13 = vpop.eup %2984 }
 0xfda   :  { %v2264_v62 = vadd.f32 1.0, %v2985_v13 }
 0xfdb   :  { %2986 = vrcp.f32 %v2050_v60 }
 0xfdc   :  { %2988 = vrcp.f32 %v2264_v62 }
 0xfe8   :  { %v2987_v34 = vpop.eup %2986 }
 0xfe9   :  { %v2989_v40 = vpop.eup %2988 }
0x103a   :  { %v2070_v6 = vpop.permute.xlu1 %2069 }
0x103b   :  { %v2072_v14 = vmul.f32 %v2987_v34, %v2070_v6 }
0x103d   :  { %2807 = vst.msk [vmem:[%s4060_s5 + $0x28] sm:$0xff] %vm76_vm0, %v2072_v14  ;;  %2808 = vmatmul.mubr.msk.f32.vlgmr.msra.gmra.mxu0 %vm76_vm0, %v2072_v14 }
0x103e   :  { %2323 = vmatpush1.msra.mxu0 %v3774_v22  ;;  %2370 = vmatprep.mubr.f32.mxu0 %v4078_v29 }
0x103f   :  { %2324 = vmatprep.subr.mxu0 %v3776_v23 }
0x1040   :  { %2325 = vmatpush1.msra.mxu0 %v3783_v11 }
0x1041   :  { %2326 = vmatprep.subr.mxu0 %v3786_v16 }
0x1042   :  { %2327 = vmatpush1.msra.mxu0 %v3790_v30 }
0x1043   :  { %2328 = vmatprep.subr.mxu0 %v3793_v31 }
0x1044   :  { %2329 = vmatpush1.msra.mxu0 %v3796_v32 }
0x1045   :  { %2330 = vmatprep.subr.mxu0 %v3799_v33 }
0x1046   :  { %2331 = vmatpush1.msra.mxu0 %v3802_v36 }
0x1047   :  { %2332 = vmatprep.subr.mxu0 %v3805_v38 }
0x1048   :  { %2333 = vmatpush1.msra.mxu0 %v3808_v42 }
0x1049   :  { %2334 = vmatprep.subr.mxu0 %v3811_v4 }
0x104a   :  { %2335 = vmatpush1.msra.mxu0 %v3814_v5  ;;  %v2284_v7 = vpop.permute.xlu0 %2283 }
0x104b   :  { %2336 = vmatprep.subr.mxu0 %v3817_v9  ;;  %v2286_v44 = vmul.f32 %v2989_v40, %v2284_v7 }
0x104c   :  { %2337 = vmatpush1.msra.mxu0 %v3820_v39 }
0x104d   :  { %2536 = vmatprep.subr.mxu0 %v3577_v47  ;;  %2814 = vmatmul.mubr.msk.f32.vlgmr.msra.gmra.mxu0 %vm76_vm0, %v2286_v44 }
0x104e   :  { %2537 = vmatpush1.msra.mxu0 %v3585_v51  ;;  %2584 = vmatprep.mubr.f32.mxu0 %v4078_v29 }
0x104f   :  { %2538 = vmatprep.subr.mxu0 %v3590_v52 }
0x1050   :  { %2539 = vmatpush1.msra.mxu0 %v3596_v53 }
0x1051   :  { %2540 = vmatprep.subr.mxu0 %v3602_v54 }
0x1052   :  { %2541 = vmatpush1.msra.mxu0 %v3609_v55 }
0x1053   :  { %2542 = vmatprep.subr.mxu0 %v3615_v56 }
0x1054   :  { %2543 = vmatpush1.msra.mxu0 %v3621_v57 }
0x1055   :  { %2544 = vmatprep.subr.mxu0 %v3627_v58 }
0x1056   :  { %2545 = vmatpush1.msra.mxu0 %v3633_v59  ;;  %v2820_v59 = vld [vmem:[%s4055_s0 + $0x78] sm:$0xff] }
0x1057   :  { %2546 = vmatprep.subr.mxu0 %v3639_v63 }
0x1058   :  { %2547 = vmatpush1.msra.mxu0 %v3645_v17 }
0x1059   :  { %2548 = vmatprep.subr.mxu0 %v3651_v0 }
0x105a   :  { %2549 = vmatpush1.msra.mxu0 %v3657_v1 }
0x105b   :  { %2550 = vmatprep.subr.mxu0 %v3663_v2 }
0x105c   :  { %2551 = vmatpush1.msra.mxu0 %v3669_v3  ;;  %v2819_v3 = vld [vmem:[%s4055_s0 + $0x70] sm:$0xff] }
0x105d   :  { %2821 = vmatmul.mubr.msk.f32.vlgmr.msra.gmra.mxu0 %vm76_vm0, %v2286_v44 }
0x10fd   :  { %v2160_v47 = vpop.f32.mrf.mxu0 }
0x10fe   :  { %v2161_v52 = vadd.f32 %v2160_v47, %v4089_v21 }
0x10ff   :  { %v2162_v51 = vpop.f32.mrf.mxu0 }
0x1100   :  { %v2163_v54 = vadd.f32 %v2162_v51, %v4090_v26 }
0x110d   :  { %v2372_v53 = vpop.f32.mrf.mxu0 }
0x110e   :  { %v2377_v55 = vadd.f32 %v2372_v53, %v2161_v52 }
0x110f   :  { %v2374_v56 = vpop.f32.mrf.mxu0 }
0x1110   :  { %v2378_v57 = vadd.f32 %v2374_v56, %v2163_v54  ;;  %v2815_v2 = vmul.f32 -1.442695, %v2377_v55 }
0x1112   :  { %2990 = vtanh.f32 %v2378_v57  ;;  %v2816_v13 = vmul.f32 -1.442695, %v2378_v57 }
0x111d   :  { %v2586_v58 = vpop.f32.mrf.mxu0 }
0x111e   :  { %v2591_v15 = vadd.f32 %v2819_v3, %v2586_v58 }
0x111f   :  { %v2588_v63 = vpop.f32.mrf.mxu0  ;;  %v2991_v17 = vpop.eup %2990 }
0x1120   :  { %2394 = vrot.lane.b32.xlu1 %v2991_v17, %s3075_s10  ;;  %v2592_v0 = vadd.f32 %v2820_v59, %v2588_v63  ;;  %v2822_v46 = vmul.f32 -1.442695, %v2591_v15 }
0x1122   :  { %2992 = vtanh.f32 %v2592_v0 }
0x1123   :  { %2994 = vpow2.f32 %v2815_v2 }
0x1124   :  { %2996 = vpow2.f32 %v2822_v46 }
0x112f   :  { %v2993_v1 = vpop.eup %2992 }
0x1130   :  { %2608 = vrot.lane.b32.xlu0 %v2993_v1, %s3075_s10  ;;  %v2995_v10 = vpop.eup %2994 }
0x1131   :  { %v2385_v12 = vadd.f32 1.0, %v2995_v10  ;;  %v2997_v8 = vpop.eup %2996 }
0x1132   :  { %v2599_v19 = vadd.f32 1.0, %v2997_v8 }
0x1133   :  { %2998 = vrcp.f32 %v2385_v12 }
0x1134   :  { %3000 = vrcp.f32 %v2599_v19 }
0x1140   :  { %v2999_v27 = vpop.eup %2998 }
0x1141   :  { %v3001_v25 = vpop.eup %3000  ;;  %v2392_v45 = vmul.f32 %v2999_v27, %v3955_v24  ;;  %v2823_v24 = vmul.f32 -1.442695, %v2592_v0 }
0x1142   :  { %v2606_v49 = vmul.f32 %v3001_v25, %v3960_v61 }
0x1192   :  { %v2395_v50 = vpop.permute.xlu1 %2394 }
0x1193   :  { %v2397_v43 = vmul.f32 %v2999_v27, %v2395_v50 }
0x1195   :  { %2399 = vrot.lane.b32.xlu1 %v2397_v43, %s3075_s10 }
0x11a2   :  { %v2609_v28 = vpop.permute.xlu0 %2608 }
0x11a3   :  { %v2611_v35 = vmul.f32 %v3001_v25, %v2609_v28 }
0x11a5   :  { %2613 = vrot.lane.b32.xlu0 %v2611_v35, %s3075_s10 }
0x1207   :  { %v2400_v41 = vpop.permute.xlu1 %2399 }
0x1208   :  { %v4017_v18 = vadd.f32 %v2400_v41, %v2392_v45 }
0x120a   :  { %3002 = vtanh.f32 %v4017_v18 }
0x1217   :  { %v3003_v48 = vpop.eup %3002  ;;  %v2614_v20 = vpop.permute.xlu0 %2613 }
0x1218   :  { %2405 = vrot.lane.b32.xlu1 %v3003_v48, %s3075_s10  ;;  %v2616_v37 = vadd.f32 %v2614_v20, %v2606_v49 }
0x121a   :  { %3004 = vtanh.f32 %v2616_v37 }
0x121b   :  { %3006 = vpow2.f32 %v2816_v13 }
0x121c   :  { %3008 = vpow2.f32 %v2823_v24 }
0x1227   :  { %v3005_v60 = vpop.eup %3004 }
0x1228   :  { %2619 = vrot.lane.b32.xlu0 %v3005_v60, %s3075_s10  ;;  %v3007_v34 = vpop.eup %3006 }
0x1229   :  { %v2386_v6 = vadd.f32 1.0, %v3007_v34  ;;  %v3009_v14 = vpop.eup %3008 }
0x122a   :  { %v2600_v44 = vadd.f32 1.0, %v3009_v14 }
0x122b   :  { %3010 = vrcp.f32 %v2386_v6 }
0x122c   :  { %3012 = vrcp.f32 %v2600_v44 }
0x1238   :  { %v3011_v62 = vpop.eup %3010 }
0x128a   :  { %v2406_v40 = vpop.permute.xlu1 %2405 }
0x128b   :  { %v2408_v7 = vmul.f32 %v3011_v62, %v2406_v40 }
0x128d   :  { %2817 = vst.msk [vmem:[%s4060_s5 + $0x30] sm:$0xff] %vm76_vm0, %v2408_v7  ;;  %2818 = vmatmul.mubr.msk.f32.vlgmr.msra.gmra.mxu1 %vm76_vm0, %v2408_v7 }
0x128e   :  { %2659 = vmatpush1.msra.mxu1 %v3774_v22  ;;  %2706 = vmatprep.mubr.f32.mxu1 %v4078_v29  ;;  %v3013_v29 = vpop.eup %3012 }
0x128f   :  { %2660 = vmatprep.subr.mxu1 %v3776_v23 }
0x1290   :  { %2661 = vmatpush1.msra.mxu1 %v3783_v11 }
0x1291   :  { %2662 = vmatprep.subr.mxu1 %v3786_v16 }
0x1292   :  { %2663 = vmatpush1.msra.mxu1 %v3790_v30 }
0x1293   :  { %2664 = vmatprep.subr.mxu1 %v3793_v31 }
0x1294   :  { %2665 = vmatpush1.msra.mxu1 %v3796_v32 }
0x1295   :  { %2666 = vmatprep.subr.mxu1 %v3799_v33 }
0x1296   :  { %2667 = vmatpush1.msra.mxu1 %v3802_v36 }
0x1297   :  { %2668 = vmatprep.subr.mxu1 %v3805_v38 }
0x1298   :  { %2669 = vmatpush1.msra.mxu1 %v3808_v42 }
0x1299   :  { %2670 = vmatprep.subr.mxu1 %v3811_v4 }
0x129a   :  { %2671 = vmatpush1.msra.mxu1 %v3814_v5  ;;  %v2620_v22 = vpop.permute.xlu0 %2619 }
0x129b   :  { %2672 = vmatprep.subr.mxu1 %v3817_v9  ;;  %v2622_v23 = vmul.f32 %v3013_v29, %v2620_v22 }
0x129c   :  { %2673 = vmatpush1.msra.mxu1 %v3820_v39 }
0x129d   :  { %2824 = vmatmul.mubr.msk.f32.vlgmr.msra.gmra.mxu1 %vm76_vm0, %v2622_v23 }
0x134d   :  { %v2496_v11 = vpop.f32.mrf.mxu1 }
0x134e   :  { %v2497_v30 = vadd.f32 %v2496_v11, %v4089_v21 }
0x134f   :  { %v2498_v16 = vpop.f32.mrf.mxu1 }
0x1350   :  { %v2499_v32 = vadd.f32 %v2498_v16, %v4090_v26 }
0x135d   :  { %v2708_v31 = vpop.f32.mrf.mxu1 }
0x135e   :  { %v2713_v33 = vadd.f32 %v2708_v31, %v2497_v30 }
0x135f   :  { %v2710_v36 = vpop.f32.mrf.mxu1 }
0x1360   :  { %v2714_v38 = vadd.f32 %v2710_v36, %v2499_v32  ;;  %v2825_v4 = vmul.f32 -1.442695, %v2713_v33 }
0x1362   :  { %3014 = vtanh.f32 %v2714_v38  ;;  %v2826_v53 = vmul.f32 -1.442695, %v2714_v38 }
0x1363   :  { %3016 = vpow2.f32 %v2825_v4 }
0x136f   :  { %v3015_v42 = vpop.eup %3014 }
0x1370   :  { %2730 = vrot.lane.b32.xlu1 %v3015_v42, %s3075_s10  ;;  %v3017_v5 = vpop.eup %3016 }
0x1371   :  { %v2721_v9 = vadd.f32 1.0, %v3017_v5 }
0x1373   :  { %3018 = vrcp.f32 %v2721_v9 }
0x1380   :  { %v3019_v39 = vpop.eup %3018 }
0x1381   :  { %v2728_v21 = vmul.f32 %v3019_v39, %v4017_v18 }
0x13e2   :  { %v2731_v61 = vpop.permute.xlu1 %2730 }
0x13e3   :  { %v2733_v47 = vmul.f32 %v3019_v39, %v2731_v61 }
0x13e5   :  { %2735 = vrot.lane.b32.xlu0 %v2733_v47, %s3075_s10 }
0x1457   :  { %v2736_v26 = vpop.permute.xlu0 %2735 }
0x1458   :  { %v2738_v51 = vadd.f32 %v2736_v26, %v2728_v21 }
0x145a   :  { %3020 = vtanh.f32 %v2738_v51 }
0x145b   :  { %3022 = vpow2.f32 %v2826_v53 }
0x1467   :  { %v3021_v52 = vpop.eup %3020 }
0x1468   :  { %2741 = vrot.lane.b32.xlu1 %v3021_v52, %s3075_s10  ;;  %v3023_v54 = vpop.eup %3022 }
0x1469   :  { %v2722_v55 = vadd.f32 1.0, %v3023_v54 }
0x146b   :  { %3024 = vrcp.f32 %v2722_v55 }
0x1478   :  { %v3025_v56 = vpop.eup %3024 }
0x14da   :  { %v2742_v57 = vpop.permute.xlu1 %2741 }
0x14db   :  { %v2744_v58 = vmul.f32 %v3025_v56, %v2742_v57 }
0x14dd   :  { %2827 = vst.msk [vmem:[%s4060_s5 + $0x38] sm:$0xff] %vm76_vm0, %v2744_v58 }
0x14de   :  { %2751 = vsyncpa [#allocation3], 1 }
0x14df   :  { %2752 = vsyncpa [#allocation5], 1 }

</bundles_post_ra>
